<compile_context>
chip_gen: v7x
topology: tpu7x:2x2x1
jax: 0.10.0
libtpu: 0.0.40
codegen_flags: <defaults>
</compile_context>

<pallas_src>
import functools

import jax
import jax.numpy as jnp
from jax.experimental import pallas as pl
from jax.experimental.pallas import tpu as pltpu


def _round_up(x, m):
    return (x + m - 1) // m * m


def _row_tile(r, cap=512):
    if r <= cap:
        return r
    for t in (512, 256, 128, 64, 32, 16, 8):
        if r % t == 0:
            return t
    return r


# ---------------------------------------------------------------------------
# Kernel 1: full-K matmul with fused bias (+ optional ReLU), optionally also
# emitting per-column (sum, sum-of-squares) stats for training-mode BN.
# ---------------------------------------------------------------------------
def _mm_compute(a_ref, b_ref, bias_ref, relu):
    acc = jnp.dot(a_ref[...], b_ref[...], preferred_element_type=jnp.float32)
    acc = acc + bias_ref[...]
    if relu:
        acc = jnp.maximum(acc, 0.0)
    return acc


def _mm_kernel(a_ref, b_ref, bias_ref, o_ref, *, relu):
    o_ref[...] = _mm_compute(a_ref, b_ref, bias_ref, relu).astype(o_ref.dtype)


def _mm_stats_kernel(a_ref, b_ref, bias_ref, o_ref, stats_ref, *, relu):
    acc = _mm_compute(a_ref, b_ref, bias_ref, relu)
    o_ref[...] = acc.astype(o_ref.dtype)

    @pl.when(pl.program_id(1) == 0)
    def _():
        stats_ref[...] = jnp.zeros_like(stats_ref)

    stats_ref[...] += jnp.concatenate(
        [jnp.sum(acc, axis=0, keepdims=True),
         jnp.sum(acc * acc, axis=0, keepdims=True)], axis=0)


def pallas_matmul(a, b, bias=None, relu=False, with_stats=False,
                  out_dtype=jnp.bfloat16):
    M, K = a.shape
    K2, N = b.shape
    assert K == K2
    a = a.astype(jnp.bfloat16)
    b = b.astype(jnp.bfloat16)
    if bias is None:
        bias = jnp.zeros((N,), jnp.float32)
    bias2 = bias.astype(jnp.float32).reshape(1, N)

    # Row (M) tiling: single full-M block when it fits comfortably in VMEM.
    if M <= 512:
        tm, Mp = M, M
    else:
        tm = 256
        Mp = _round_up(M, tm)
        if Mp != M:  # zero rows contribute nothing to stats; sliced off below
            a = jnp.zeros((Mp, K), a.dtype).at[:M].set(a)
    # Column (N) tiling: full N when small, else lane-dense 256-wide tiles.
    if N <= 256:
        tn, Np = N, N
    else:
        tn = 256
        Np = _round_up(N, tn)
        if Np != N:
            b = jnp.zeros((K, Np), b.dtype).at[:, :N].set(b)
            bias2 = jnp.zeros((1, Np), jnp.float32).at[:, :N].set(bias2)

    grid = (Np // tn, Mp // tm)  # N (parallel) first, M (stats reduce) last.
    in_specs = [
        pl.BlockSpec((tm, K), lambda j, i: (i, 0)),
        pl.BlockSpec((K, tn), lambda j, i: (0, j)),
        pl.BlockSpec((1, tn), lambda j, i: (0, j)),
    ]
    cparams = pltpu.CompilerParams(
        dimension_semantics=("parallel", "arbitrary"))

    if with_stats:
        y, stats = pl.pallas_call(
            functools.partial(_mm_stats_kernel, relu=relu),
            out_shape=(jax.ShapeDtypeStruct((Mp, Np), out_dtype),
                       jax.ShapeDtypeStruct((2, Np), jnp.float32)),
            grid_spec=pltpu.PrefetchScalarGridSpec(
                num_scalar_prefetch=0, grid=grid, in_specs=in_specs,
                out_specs=[pl.BlockSpec((tm, tn), lambda j, i: (i, j)),
                           pl.BlockSpec((2, tn), lambda j, i: (0, j))]),
            compiler_params=cparams,
        )(a, b, bias2)
        if Mp != M or Np != N:
            y = y[:M, :N]
            stats = stats[:, :N]
        return y, stats

    y = pl.pallas_call(
        functools.partial(_mm_kernel, relu=relu),
        out_shape=jax.ShapeDtypeStruct((Mp, Np), out_dtype),
        grid_spec=pltpu.PrefetchScalarGridSpec(
            num_scalar_prefetch=0, grid=grid, in_specs=in_specs,
            out_specs=pl.BlockSpec((tm, tn), lambda j, i: (i, j))),
        compiler_params=cparams,
    )(a, b, bias2)
    if Mp != M or Np != N:
        y = y[:M, :N]
    return y


# ---------------------------------------------------------------------------
# Kernel 2: fused per-channel affine (BN normalize) + residual + ReLU.
# ---------------------------------------------------------------------------
def _affine_kernel(x_ref, s_ref, b_ref, o_ref, *, relu):
    y = x_ref[...].astype(jnp.float32) * s_ref[...] + b_ref[...]
    if relu:
        y = jnp.maximum(y, 0.0)
    o_ref[...] = y.astype(o_ref.dtype)


def _affine_res_kernel(x_ref, s_ref, b_ref, r_ref, o_ref, *, relu):
    y = (x_ref[...].astype(jnp.float32) * s_ref[...] + b_ref[...]
         + r_ref[...].astype(jnp.float32))
    if relu:
        y = jnp.maximum(y, 0.0)
    o_ref[...] = y.astype(o_ref.dtype)


def pallas_affine(x, scale, shift, residual=None, relu=False,
                  out_dtype=jnp.bfloat16):
    R, C = x.shape
    tr = _row_tile(R)
    s2 = scale.astype(jnp.float32).reshape(1, C)
    b2 = shift.astype(jnp.float32).reshape(1, C)
    in_specs = [
        pl.BlockSpec((tr, C), lambda i: (i, 0)),
        pl.BlockSpec((1, C), lambda i: (0, 0)),
        pl.BlockSpec((1, C), lambda i: (0, 0)),
    ]
    args = [x, s2, b2]
    if residual is not None:
        in_specs.append(pl.BlockSpec((tr, C), lambda i: (i, 0)))
        args.append(residual)
        kernel = functools.partial(_affine_res_kernel, relu=relu)
    else:
        kernel = functools.partial(_affine_kernel, relu=relu)
    return pl.pallas_call(
        kernel,
        out_shape=jax.ShapeDtypeStruct((R, C), out_dtype),
        grid_spec=pltpu.PrefetchScalarGridSpec(
            num_scalar_prefetch=0, grid=(R // tr,), in_specs=in_specs,
            out_specs=pl.BlockSpec((tr, C), lambda i: (i, 0))),
        compiler_params=pltpu.CompilerParams(
            dimension_semantics=("parallel",)),
    )(*args)


# ---------------------------------------------------------------------------
# Kernel 3: running max over the pooling-window axis (MaxPool2d 3x3/s2/p1).
# ---------------------------------------------------------------------------
def _winmax_kernel(p_ref, o_ref):
    x = p_ref[...]
    m = x[:, 0, :]
    for w in range(1, x.shape[1]):
        m = jnp.maximum(m, x[:, w, :])
    o_ref[...] = m


def pallas_window_max(p):
    # p: (rows, window, C) -> max over window axis, lane-dense C output.
    R, W, C = p.shape
    tr = _row_tile(R)
    return pl.pallas_call(
        _winmax_kernel,
        out_shape=jax.ShapeDtypeStruct((R, C), p.dtype),
        grid_spec=pltpu.PrefetchScalarGridSpec(
            num_scalar_prefetch=0, grid=(R // tr,),
            in_specs=[pl.BlockSpec((tr, W, C), lambda i: (i, 0, 0))],
            out_specs=pl.BlockSpec((tr, C), lambda i: (i, 0))),
        compiler_params=pltpu.CompilerParams(
            dimension_semantics=("parallel",)),
    )(p)


# ---------------------------------------------------------------------------
# JAX glue: im2col patch extraction, conv+BN wrapper, params, forward.
# ---------------------------------------------------------------------------
def _im2col(x, kh, kw, stride, pad, pad_value=0.0):
    # x: (N, H, W, C) NHWC -> (N, Ho, Wo, kh*kw, C) patches (K-order kh,kw,C).
    N, H, W, C = x.shape
    xp = jnp.pad(x, ((0, 0), (pad, pad), (pad, pad), (0, 0)),
                 constant_values=pad_value)
    Ho = (H + 2 * pad - kh) // stride + 1
    Wo = (W + 2 * pad - kw) // stride + 1
    cols = []
    for i in range(kh):
        for j in range(kw):
            cols.append(xp[:, i:i + (Ho - 1) * stride + 1:stride,
                           j:j + (Wo - 1) * stride + 1:stride, :])
    patches = jnp.stack(cols, axis=3)
    return patches, (N, Ho, Wo)


def conv_bn(x, conv, gamma, beta, relu=False, residual=None, eps=1e-5):
    # Conv (no bias) -> training-mode BN -> optional residual -> optional ReLU.
    # BN batch stats come fused out of the matmul epilogue (no extra pass).
    # TODO(synk): 3x3 patch gather still materializes im2col in HBM (bf16);
    # an index_map shifted-window read would remove the 9x expansion.
    kh, kw, stride, pad = conv['kh'], conv['kw'], conv['stride'], conv['pad']
    Cin = x.shape[-1]
    patches, (N, Ho, Wo) = _im2col(x, kh, kw, stride, pad)
    a = patches.reshape(N * Ho * Wo, kh * kw * Cin)
    y, stats = pallas_matmul(a, conv['w'], with_stats=True,
                             out_dtype=jnp.bfloat16)
    R = N * Ho * Wo
    mean = stats[0] / R
    var = stats[1] / R - mean * mean            # biased batch variance
    scale = gamma * jax.lax.rsqrt(var + eps)
    shift = beta - mean * scale
    res2 = None if residual is None else residual.reshape(R, -1)
    z = pallas_affine(y, scale, shift, residual=res2, relu=relu)
    return z.reshape(N, Ho, Wo, -1)


def maxpool2d(x, k=3, stride=2, pad=1):
    N, H, W, C = x.shape
    neg = float(jnp.finfo(x.dtype).min)
    patches, (N, Ho, Wo) = _im2col(x, k, k, stride, pad, pad_value=neg)
    p = patches.reshape(N * Ho * Wo, k * k, C)   # lane-dense, no transpose
    y = pallas_window_max(p)
    return y.reshape(N, Ho, Wo, C)


def _conv_param(key, o, i, kh, kw, stride, pad):
    fan_in = i * kh * kw
    std = (2.0 / fan_in) ** 0.5
    w = jax.random.normal(key, (o, i, kh, kw), jnp.float32) * std
    # Pre-transpose to matmul layout (kh,kw,Cin)xO and pre-cast to bf16 once.
    w_mat = jnp.transpose(w, (2, 3, 1, 0)).reshape(kh * kw * i, o)
    return {'w': w_mat.astype(jnp.bfloat16), 'kh': kh, 'kw': kw,
            'stride': stride, 'pad': pad}


def _init_linear(key, i, o):
    k1, k2 = jax.random.split(key)
    bound = 1.0 / (i ** 0.5)
    w = jax.random.uniform(k1, (o, i), jnp.float32, -bound, bound)
    b = jax.random.uniform(k2, (o,), jnp.float32, -bound, bound)
    return w.T.astype(jnp.bfloat16), b           # (in, out) matmul layout


def init_model_params(key, hidden_dim):
    num_classes = 4 * hidden_dim
    keys = iter(jax.random.split(key, 64))
    p = {'conv1': _conv_param(next(keys), 64, 3, 7, 7, stride=2, pad=3),
         'bn1': (jnp.ones(64, jnp.float32), jnp.zeros(64, jnp.float32)),
         'layers': {}}
    in_c = 64
    for li, out_c in enumerate([64, 128, 256, 512], start=1):
        blocks = []
        for bi in range(2):
            stride = 2 if (li > 1 and bi == 0) else 1
            blk = {
                'conv1': _conv_param(next(keys), out_c, in_c, 3, 3, stride, 1),
                'bn1': (jnp.ones(out_c, jnp.float32),
                        jnp.zeros(out_c, jnp.float32)),
                'conv2': _conv_param(next(keys), out_c, out_c, 3, 3, 1, 1),
                'bn2': (jnp.ones(out_c, jnp.float32),
                        jnp.zeros(out_c, jnp.float32)),
            }
            if stride != 1 or in_c != out_c:
                blk['down_conv'] = _conv_param(next(keys), out_c, in_c, 1, 1,
                                               stride, 0)
                blk['down_bn'] = (jnp.ones(out_c, jnp.float32),
                                  jnp.zeros(out_c, jnp.float32))
            blocks.append(blk)
            in_c = out_c
        p['layers'][f'layer{li}'] = blocks
    p['fc'] = _init_linear(next(keys), 512, num_classes)
    p['mlp'] = _init_linear(next(keys), num_classes, hidden_dim)
    return p


def basic_block(x, blk):
    identity = x
    out = conv_bn(x, blk['conv1'], *blk['bn1'], relu=True)
    if 'down_conv' in blk:
        identity = conv_bn(x, blk['down_conv'], *blk['down_bn'], relu=False)
    out = conv_bn(out, blk['conv2'], *blk['bn2'], relu=True, residual=identity)
    return out


def model_forward(params, x_nchw):
    # layout: NCHW (torch) -> NHWC bf16 (kernel) at the boundary.
    x = jnp.transpose(x_nchw, (0, 2, 3, 1)).astype(jnp.bfloat16)
    x = conv_bn(x, params['conv1'], *params['bn1'], relu=True)
    x = maxpool2d(x, 3, 2, 1)
    for li in range(1, 5):
        for blk in params['layers'][f'layer{li}']:
            x = basic_block(x, blk)
    # adaptive avg-pool to 1x1 (spatial is 1x1 here) kept as JAX glue.
    N, H, W, C = x.shape
    feat = jnp.mean(x.astype(jnp.float32).reshape(N, H * W, C), axis=1)
    w_fc, b_fc = params['fc']
    # resnet fc followed immediately by mlp's ReLU -> fuse ReLU into matmul.
    hid = pallas_matmul(feat, w_fc, bias=b_fc, relu=True,
                        out_dtype=jnp.bfloat16)
    w_mlp, b_mlp = params['mlp']
    out = pallas_matmul(hid, w_mlp, bias=b_mlp, relu=False,
                        out_dtype=jnp.float32)
    return out


if __name__ == "__main__":
    hidden_dim = 8
    key = jax.random.PRNGKey(0)
    kp, kx = jax.random.split(key)
    params = init_model_params(kp, hidden_dim)
    x = jax.random.normal(kx, (2, 3, 32, 32), jnp.float32)
    out = model_forward(params, x)
    out = jax.block_until_ready(out)
    assert out.shape == (2, hidden_dim) and out.dtype == jnp.float32
    print("KERNEL_OK")
</pallas_src>

<mosaic_0001>
module attributes {stable_mosaic.version = 11 : i64} {
  func.func @_mm_stats_kernel(%arg0: i32, %arg1: i32, %arg2: memref<512x147xbf16, #tpu.memory_space<vmem>>, %arg3: memref<147x64xbf16, #tpu.memory_space<vmem>>, %arg4: memref<1x64xf32, #tpu.memory_space<vmem>>, %arg5: memref<512x64xbf16, #tpu.memory_space<vmem>>, %arg6: memref<2x64xf32, #tpu.memory_space<vmem>>) attributes {dimension_semantics = [#tpu.dimension_semantics<parallel>, #tpu.dimension_semantics<arbitrary>], iteration_bounds = array<i64: 1, 1>, scalar_prefetch = 0 : i64, scratch_operands = 0 : i64, tpu.core_type = #tpu.core_type<tc>, window_params = [{transform_indices = @transform_0, window_bounds = array<i64: 512, 147>}, {transform_indices = @transform_1, window_bounds = array<i64: 147, 64>}, {transform_indices = @transform_2, window_bounds = array<i64: 1, 64>}, {transform_indices = @transform_3, window_bounds = array<i64: 512, 64>}, {transform_indices = @transform_4, window_bounds = array<i64: 2, 64>}]} {
    %c0 = arith.constant 0 : index
    %c0_0 = arith.constant 0 : index
    %0 = vector.load %arg2[%c0, %c0_0] : memref<512x147xbf16, #tpu.memory_space<vmem>>, vector<512x147xbf16>
    %c0_1 = arith.constant 0 : index
    %c0_2 = arith.constant 0 : index
    %1 = vector.load %arg3[%c0_1, %c0_2] : memref<147x64xbf16, #tpu.memory_space<vmem>>, vector<147x64xbf16>
    %cst = arith.constant dense<0.000000e+00> : vector<512x64xf32>
    %2 = tpu.matmul %0, %1, %cst {dimension_numbers = #tpu.dot_dimension_numbers<[1], [0], [0], [1], [0, 0, 1, 1], [], []>} : vector<512x147xbf16>, vector<147x64xbf16>, vector<512x64xf32> -> vector<512x64xf32>
    %c0_3 = arith.constant 0 : index
    %c0_4 = arith.constant 0 : index
    %3 = vector.load %arg4[%c0_3, %c0_4] : memref<1x64xf32, #tpu.memory_space<vmem>>, vector<1x64xf32>
    %4 = vector.broadcast %3 : vector<1x64xf32> to vector<512x64xf32>
    %5 = arith.addf %2, %4 : vector<512x64xf32>
    %6 = arith.truncf %5 : vector<512x64xf32> to vector<512x64xbf16>
    %c0_5 = arith.constant 0 : index
    %c0_6 = arith.constant 0 : index
    %7 = vector.load %arg5[%c0_5, %c0_6] : memref<512x64xbf16, #tpu.memory_space<vmem>>, vector<512x64xbf16>
    tpu.vector_store %arg5[%c0_5, %c0_6], %6 {strides = array<i32>} : memref<512x64xbf16, #tpu.memory_space<vmem>>, vector<512x64xbf16>,
    %c0_i32 = arith.constant 0 : i32
    %8 = arith.cmpi eq, %arg1, %c0_i32 : i32
    %9 = arith.extui %8 : i1 to i32
    %c0_i32_7 = arith.constant 0 : i32
    %10 = arith.cmpi ne, %9, %c0_i32_7 : i32
    scf.if %10 {
      %cst_14 = arith.constant 0.000000e+00 : f32
      %20 = vector.broadcast %cst_14 : f32 to vector<2x64xf32>
      %c0_15 = arith.constant 0 : index
      %c0_16 = arith.constant 0 : index
      %21 = vector.load %arg6[%c0_15, %c0_16] : memref<2x64xf32, #tpu.memory_space<vmem>>, vector<2x64xf32>
      tpu.vector_store %arg6[%c0_15, %c0_16], %20 {strides = array<i32>} : memref<2x64xf32, #tpu.memory_space<vmem>>, vector<2x64xf32>,
    } else {
    }
    %c0_8 = arith.constant 0 : index
    %c0_9 = arith.constant 0 : index
    %11 = vector.load %arg6[%c0_8, %c0_9] : memref<2x64xf32, #tpu.memory_space<vmem>>, vector<2x64xf32>
    %cst_10 = arith.constant dense<0.000000e+00> : vector<64xf32>
    %12 = vector.multi_reduction <add>, %5, %cst_10 [0] : vector<512x64xf32> to vector<64xf32>
    %13 = vector.shape_cast %12 : vector<64xf32> to vector<1x64xf32>
    %14 = arith.mulf %5, %5 : vector<512x64xf32>
    %cst_11 = arith.constant dense<0.000000e+00> : vector<64xf32>
    %15 = vector.multi_reduction <add>, %14, %cst_11 [0] : vector<512x64xf32> to vector<64xf32>
    %16 = vector.shape_cast %15 : vector<64xf32> to vector<1x64xf32>
    %17 = tpu.concatenate %13, %16 in 0 : vector<1x64xf32>, vector<1x64xf32> -> vector<2x64xf32>
    %18 = arith.addf %11, %17 : vector<2x64xf32>
    %c0_12 = arith.constant 0 : index
    %c0_13 = arith.constant 0 : index
    %19 = vector.load %arg6[%c0_12, %c0_13] : memref<2x64xf32, #tpu.memory_space<vmem>>, vector<2x64xf32>
    tpu.vector_store %arg6[%c0_12, %c0_13], %18 {strides = array<i32>} : memref<2x64xf32, #tpu.memory_space<vmem>>, vector<2x64xf32>,
    return
  }
  func.func @transform_0(%arg0: i32, %arg1: i32) -> (i32, i32) {
    %c0_i32 = arith.constant 0 : i32
    %c0_i32_0 = arith.constant 0 : i32
    return %arg1, %c0_i32 : i32, i32
  }
  func.func @transform_1(%arg0: i32, %arg1: i32) -> (i32, i32) {
    %c0_i32 = arith.constant 0 : i32
    %c0_i32_0 = arith.constant 0 : i32
    return %c0_i32, %arg0 : i32, i32
  }
  func.func @transform_2(%arg0: i32, %arg1: i32) -> (i32, i32) {
    %c0_i32 = arith.constant 0 : i32
    %c0_i32_0 = arith.constant 0 : i32
    return %c0_i32, %arg0 : i32, i32
  }
  func.func @transform_3(%arg0: i32, %arg1: i32) -> (i32, i32) {
    %c0_i32 = arith.constant 0 : i32
    return %arg1, %arg0 : i32, i32
  }
  func.func @transform_4(%arg0: i32, %arg1: i32) -> (i32, i32) {
    %c0_i32 = arith.constant 0 : i32
    %c0_i32_0 = arith.constant 0 : i32
    return %c0_i32, %arg0 : i32, i32
  }
}

</mosaic_0001>

<bundles_post_ra>
// kernel: tpu_custom_call.1
= control target key start
LH: loop header
LB: loop body
LE: loop exit
PB: predicated region body
PF: predicated region fallthrough
CT: control target
= control target key end

     0   :  { %v1916_v1 = vmov 0   ;;  %vm453_vm0 = vcmask 154624   ;;  %vm550_vm1 = vcmask 1040384   ;;  %vm551_vm2 = vcmask 1041408   ;;  %s2892_s0 = inlined_call_operand.vmem [shape: bf16[512,147], index: 0, kind: input, shape index: {}]   ;;  %s2893_s1 = inlined_call_operand.vmem [shape: bf16[147,64], index: 1, kind: input, shape index: {}]   ;;  %s2894_s2 = inlined_call_operand.vmem [shape: f32[1,64], index: 2, kind: input, shape index: {}]   ;;  %s2895_s3 = inlined_call_operand.vmem [shape: bf16[512,64], index: 3, kind: output, shape index: {0}]   ;;  %s2896_s4 = inlined_call_operand.hbm [shape: f32[2,64], index: 4, kind: output, shape index: {1}]  }
   0x1   :  { %v1786_v0 = vld [vmem:[%s2893_s1] sm:$0xff]   ;;  %557 = vmatprep.subr.bf16.mxu0 %v1916_v1  ;;  %1762 = vmatprep.subr.bf16.mxu1 %v1916_v1  ;;  %v1787_v2 = vld [vmem:[%s2893_s1 + $0x8] sm:$0xff]   ;;  %v1788_v3 = vld [vmem:[%s2893_s1 + $0x10] sm:$0xff]   ;;  %v1917_v11 = vmov 65535  }
   0x2   :  { %558 = vmatpush1.bf16.msra.mxu0 %v1786_v0  ;;  %1772 = vmatpush1.bf16.msra.mxu1 %v1786_v0  ;;  %v1789_v4 = vld [vmem:[%s2893_s1 + $0x18] sm:$0xff]   ;;  %v1798_v5 = vld [vmem:[%s2892_s0 + $0x4] ss:$8 sps:$4 sm:$0xff]   ;;  %v1792_v9 = vld [vmem:[%s2893_s1 + $0x30] sm:$0xff]   ;;  %v552_v12 = vsel %vm550_vm1, 4294967295, %v1917_v11 }
   0x3   :  { %559 = vmatprep.subr.bf16.mxu0 %v1916_v1  ;;  %1763 = vmatprep.subr.bf16.mxu1 %v1916_v1  ;;  %v1790_v6 = vld [vmem:[%s2893_s1 + $0x20] sm:$0xff]   ;;  %v1791_v7 = vld [vmem:[%s2893_s1 + $0x28] sm:$0xff]   ;;  %v1793_v10 = vld [vmem:[%s2893_s1 + $0x38] sm:$0xff]   ;;  %v553_v15 = vsel %vm551_vm2, %v552_v12, 0 }
   0x4   :  { %1602 = vmatprep.mubr.msk.bf16.mxu0 %vm453_vm0, %v1798_v5  ;;  %v1822_v8 = vld [vmem:[%s2892_s0 + $0x104] ss:$8 sps:$4 sm:$0xff]   ;;  %v1795_v14 = vld [vmem:[%s2893_s1 + $0x48] ss:$0 sps:$4 sm:$0x33]  }
   0x5   :  { %1618 = vmatprep.mubr.msk.bf16.mxu1 %vm453_vm0, %v1822_v8  ;;  %v1794_v13 = vld [vmem:[%s2893_s1 + $0x40] sm:$0xff]   ;;  %v555_v16 = vand.u32 %v1795_v14, %v553_v15  ;;  %v1799_v19 = vld [vmem:[%s2892_s0 + $0x14] ss:$8 sps:$4 sm:$0xff]   ;;  %v1801_v21 = vld [vmem:[%s2892_s0 + $0x10] ss:$8 sps:$4 sm:$0xff]  }
   0x6   :  { %560 = vmatpush1.bf16.msra.mxu0 %v1787_v2  ;;  %1773 = vmatpush1.bf16.msra.mxu1 %v1787_v2  ;;  %v1796_v17 = vld [vmem:[%s2892_s0] ss:$8 sps:$4 sm:$0xff]   ;;  %v1826_v20 = vld [vmem:[%s2892_s0 + $0x114] ss:$8 sps:$4 sm:$0xff]   ;;  %v1828_v22 = vld [vmem:[%s2892_s0 + $0x110] ss:$8 sps:$4 sm:$0xff]  }
   0x7   :  { %561 = vmatprep.subr.bf16.mxu0 %v1916_v1  ;;  %1764 = vmatprep.subr.bf16.mxu1 %v1916_v1  ;;  %v1820_v18 = vld [vmem:[%s2892_s0 + $0x100] ss:$8 sps:$4 sm:$0xff]   ;;  %v1802_v23 = vld [vmem:[%s2892_s0 + $0x24] ss:$8 sps:$4 sm:$0xff]  }
   0x8   :  { %v1832_v24 = vld [vmem:[%s2892_s0 + $0x124] ss:$8 sps:$4 sm:$0xff]  }
   0xa   :  { %562 = vmatpush1.bf16.msra.mxu0 %v1788_v3  ;;  %1774 = vmatpush1.bf16.msra.mxu1 %v1788_v3 }
   0xb   :  { %563 = vmatprep.subr.bf16.mxu0 %v1916_v1  ;;  %1765 = vmatprep.subr.bf16.mxu1 %v1916_v1 }
   0xe   :  { %564 = vmatpush1.bf16.msra.mxu0 %v1789_v4  ;;  %1775 = vmatpush1.bf16.msra.mxu1 %v1789_v4 }
   0xf   :  { %565 = vmatprep.subr.bf16.mxu0 %v1916_v1  ;;  %1766 = vmatprep.subr.bf16.mxu1 %v1916_v1 }
  0x12   :  { %566 = vmatpush1.bf16.msra.mxu0 %v1790_v6  ;;  %1776 = vmatpush1.bf16.msra.mxu1 %v1790_v6 }
  0x13   :  { %567 = vmatprep.subr.bf16.mxu0 %v1916_v1  ;;  %1767 = vmatprep.subr.bf16.mxu1 %v1916_v1 }
  0x16   :  { %568 = vmatpush1.bf16.msra.mxu0 %v1791_v7  ;;  %1777 = vmatpush1.bf16.msra.mxu1 %v1791_v7 }
  0x17   :  { %569 = vmatprep.subr.bf16.mxu0 %v1916_v1  ;;  %1768 = vmatprep.subr.bf16.mxu1 %v1916_v1 }
  0x1a   :  { %570 = vmatpush1.bf16.msra.mxu0 %v1792_v9  ;;  %1778 = vmatpush1.bf16.msra.mxu1 %v1792_v9 }
  0x1b   :  { %571 = vmatprep.subr.bf16.mxu0 %v1916_v1  ;;  %1769 = vmatprep.subr.bf16.mxu1 %v1916_v1 }
  0x1e   :  { %572 = vmatpush1.bf16.msra.mxu0 %v1793_v10  ;;  %1779 = vmatpush1.bf16.msra.mxu1 %v1793_v10 }
  0x1f   :  { %573 = vmatprep.subr.bf16.mxu0 %v1916_v1  ;;  %1770 = vmatprep.subr.bf16.mxu1 %v1916_v1 }
  0x22   :  { %574 = vmatpush1.bf16.msra.mxu0 %v1794_v13  ;;  %1780 = vmatpush1.bf16.msra.mxu1 %v1794_v13 }
  0x23   :  { %575 = vmatprep.subr.bf16.mxu0 %v1916_v1  ;;  %1771 = vmatprep.subr.bf16.mxu1 %v1916_v1 }
  0x26   :  { %576 = vmatpush1.bf16.msra.mxu0 %v555_v16  ;;  %1781 = vmatpush1.bf16.msra.mxu1 %v555_v16 }
  0x29   :  { %590 = vmatmul.mubr.bf16.vlgmr.msra.gmra.mrb[0].mxu0 %v1796_v17  ;;  %718 = vmatmul.mubr.bf16.vlgmr.msra.gmra.mrb[0].mxu1 %v1820_v18 }
  0x2a   :  { %1603 = vmatprep.mubr.msk.bf16.mxu0 %vm453_vm0, %v1799_v19  ;;  %1619 = vmatprep.mubr.msk.bf16.mxu1 %vm453_vm0, %v1826_v20 }
  0x31   :  { %598 = vmatmul.mubr.bf16.gmra.mrb[4].mxu0 %v1801_v21  ;;  %726 = vmatmul.mubr.bf16.gmra.mrb[4].mxu1 %v1828_v22 }
  0x32   :  { %1604 = vmatprep.mubr.msk.bf16.mxu0 %vm453_vm0, %v1802_v23  ;;  %1620 = vmatprep.mubr.msk.bf16.mxu1 %vm453_vm0, %v1832_v24 }
  0x33   :  { %10 = vsyncpa [#allocation3], 0  ;;  %v1804_v25 = vld [vmem:[%s2892_s0 + $0x20] ss:$8 sps:$4 sm:$0xff]   ;;  %v1805_v27 = vld [vmem:[%s2892_s0 + $0x34] ss:$8 sps:$4 sm:$0xff]  }
  0x34   :  { %v1834_v26 = vld [vmem:[%s2892_s0 + $0x120] ss:$8 sps:$4 sm:$0xff]   ;;  %v1838_v28 = vld [vmem:[%s2892_s0 + $0x134] ss:$8 sps:$4 sm:$0xff]   ;;  %v1807_v29 = vld [vmem:[%s2892_s0 + $0x30] ss:$8 sps:$4 sm:$0xff]  }
  0x35   :  { %v1840_v30 = vld [vmem:[%s2892_s0 + $0x130] ss:$8 sps:$4 sm:$0xff]   ;;  %v1808_v31 = vld [vmem:[%s2892_s0 + $0x44] ss:$8 sps:$4 sm:$0xff]   ;;  %v1810_v33 = vld [vmem:[%s2892_s0 + $0x40] ss:$8 sps:$4 sm:$0xff]  }
  0x36   :  { %v1844_v32 = vld [vmem:[%s2892_s0 + $0x144] ss:$8 sps:$4 sm:$0xff]   ;;  %v1846_v34 = vld [vmem:[%s2892_s0 + $0x140] ss:$8 sps:$4 sm:$0xff]   ;;  %v1811_v35 = vld [vmem:[%s2892_s0 + $0x54] ss:$8 sps:$4 sm:$0xff]  }
  0x37   :  { %v1850_v36 = vld [vmem:[%s2892_s0 + $0x154] ss:$8 sps:$4 sm:$0xff]   ;;  %v1813_v37 = vld [vmem:[%s2892_s0 + $0x50] ss:$8 sps:$4 sm:$0xff]   ;;  %v1814_v39 = vld [vmem:[%s2892_s0 + $0x64] ss:$8 sps:$4 sm:$0xff]  }
  0x38   :  { %v1852_v38 = vld [vmem:[%s2892_s0 + $0x150] ss:$8 sps:$4 sm:$0xff]   ;;  %v1856_v40 = vld [vmem:[%s2892_s0 + $0x164] ss:$8 sps:$4 sm:$0xff]   ;;  %v1816_v41 = vld [vmem:[%s2892_s0 + $0x60] ss:$8 sps:$4 sm:$0xff]  }
  0x39   :  { %606 = vmatmul.mubr.bf16.gmra.mrb[8].mxu0 %v1804_v25  ;;  %734 = vmatmul.mubr.bf16.gmra.mrb[8].mxu1 %v1834_v26  ;;  %v1858_v42 = vld [vmem:[%s2892_s0 + $0x160] ss:$8 sps:$4 sm:$0xff]   ;;  %v1817_v43 = vld [vmem:[%s2892_s0 + $0x74] ss:$8 sps:$4 sm:$0xff]   ;;  %v1819_v45 = vld [vmem:[%s2892_s0 + $0x70] ss:$8 sps:$4 sm:$0xff]  }
  0x3a   :  { %1605 = vmatprep.mubr.msk.bf16.mxu0 %vm453_vm0, %v1805_v27  ;;  %1621 = vmatprep.mubr.msk.bf16.mxu1 %vm453_vm0, %v1838_v28  ;;  %v1862_v44 = vld [vmem:[%s2892_s0 + $0x174] ss:$8 sps:$4 sm:$0xff]   ;;  %v1864_v46 = vld [vmem:[%s2892_s0 + $0x170] ss:$8 sps:$4 sm:$0xff]   ;;  %v1823_v47 = vld [vmem:[%s2892_s0 + $0x84] ss:$8 sps:$4 sm:$0xff]  }
  0x3b   :  { %v1868_v48 = vld [vmem:[%s2892_s0 + $0x184] ss:$8 sps:$4 sm:$0xff]   ;;  %v1825_v49 = vld [vmem:[%s2892_s0 + $0x80] ss:$8 sps:$4 sm:$0xff]   ;;  %v1829_v51 = vld [vmem:[%s2892_s0 + $0x94] ss:$8 sps:$4 sm:$0xff]  }
  0x3c   :  { %v1870_v50 = vld [vmem:[%s2892_s0 + $0x180] ss:$8 sps:$4 sm:$0xff]   ;;  %v1871_v52 = vld [vmem:[%s2892_s0 + $0x194] ss:$8 sps:$4 sm:$0xff]   ;;  %v1831_v53 = vld [vmem:[%s2892_s0 + $0x90] ss:$8 sps:$4 sm:$0xff]  }
  0x3d   :  { %v1873_v54 = vld [vmem:[%s2892_s0 + $0x190] ss:$8 sps:$4 sm:$0xff]   ;;  %v1835_v55 = vld [vmem:[%s2892_s0 + $0xa4] ss:$8 sps:$4 sm:$0xff]   ;;  %v1837_v57 = vld [vmem:[%s2892_s0 + $0xa0] ss:$8 sps:$4 sm:$0xff]  }
  0x3e   :  { %v1874_v56 = vld [vmem:[%s2892_s0 + $0x1a4] ss:$8 sps:$4 sm:$0xff]   ;;  %v1876_v58 = vld [vmem:[%s2892_s0 + $0x1a0] ss:$8 sps:$4 sm:$0xff]   ;;  %v1841_v59 = vld [vmem:[%s2892_s0 + $0xb4] ss:$8 sps:$4 sm:$0xff]  }
  0x3f   :  { %v1877_v60 = vld [vmem:[%s2892_s0 + $0x1b4] ss:$8 sps:$4 sm:$0xff]   ;;  %v1843_v61 = vld [vmem:[%s2892_s0 + $0xb0] ss:$8 sps:$4 sm:$0xff]   ;;  %v1847_v63 = vld [vmem:[%s2892_s0 + $0xc4] ss:$8 sps:$4 sm:$0xff]  }
  0x40   :  { %v1879_v62 = vld [vmem:[%s2892_s0 + $0x1b0] ss:$8 sps:$4 sm:$0xff]   ;;  %v1880_v0 = vld [vmem:[%s2892_s0 + $0x1c4] ss:$8 sps:$4 sm:$0xff]   ;;  %v1849_v1 = vld [vmem:[%s2892_s0 + $0xc0] ss:$8 sps:$4 sm:$0xff]  }
  0x41   :  { %614 = vmatmul.mubr.bf16.gmra.mrb[12].mxu0 %v1807_v29  ;;  %742 = vmatmul.mubr.bf16.gmra.mrb[12].mxu1 %v1840_v30  ;;  %v1882_v2 = vld [vmem:[%s2892_s0 + $0x1c0] ss:$8 sps:$4 sm:$0xff]   ;;  %v1853_v3 = vld [vmem:[%s2892_s0 + $0xd4] ss:$8 sps:$4 sm:$0xff]   ;;  %v1855_v5 = vld [vmem:[%s2892_s0 + $0xd0] ss:$8 sps:$4 sm:$0xff]  }
  0x42   :  { %1606 = vmatprep.mubr.msk.bf16.mxu0 %vm453_vm0, %v1808_v31  ;;  %1622 = vmatprep.mubr.msk.bf16.mxu1 %vm453_vm0, %v1844_v32  ;;  %v1883_v4 = vld [vmem:[%s2892_s0 + $0x1d4] ss:$8 sps:$4 sm:$0xff]   ;;  %v1885_v6 = vld [vmem:[%s2892_s0 + $0x1d0] ss:$8 sps:$4 sm:$0xff]   ;;  %v1859_v7 = vld [vmem:[%s2892_s0 + $0xe4] ss:$8 sps:$4 sm:$0xff]  }
  0x43   :  { %v1886_v8 = vld [vmem:[%s2892_s0 + $0x1e4] ss:$8 sps:$4 sm:$0xff]   ;;  %v1861_v9 = vld [vmem:[%s2892_s0 + $0xe0] ss:$8 sps:$4 sm:$0xff]   ;;  %v1865_v11 = vld [vmem:[%s2892_s0 + $0xf4] ss:$8 sps:$4 sm:$0xff]  }
  0x44   :  { %v1888_v10 = vld [vmem:[%s2892_s0 + $0x1e0] ss:$8 sps:$4 sm:$0xff]   ;;  %v1889_v12 = vld [vmem:[%s2892_s0 + $0x1f4] ss:$8 sps:$4 sm:$0xff]   ;;  %v1867_v13 = vld [vmem:[%s2892_s0 + $0xf0] ss:$8 sps:$4 sm:$0xff]  }
  0x45   :  { %v1891_v14 = vld [vmem:[%s2892_s0 + $0x1f0] ss:$8 sps:$4 sm:$0xff]   ;;  %v2203_v15 = vld [vmem:[%s2894_s2] ss:$0 sm:$0xff]  ;;  %vm1102_vm3 = vcmask 519168   ;;  %vm1174_vm4 = vcmask 523264  }
  0x46   :  { %vm1171_vm5 = vcmask 517120  }
  0x49   :  { %622 = vmatmul.mubr.bf16.gmra.mrb[16].mxu0 %v1810_v33  ;;  %750 = vmatmul.mubr.bf16.gmra.mrb[16].mxu1 %v1846_v34 }
  0x4a   :  { %1607 = vmatprep.mubr.msk.bf16.mxu0 %vm453_vm0, %v1811_v35  ;;  %1623 = vmatprep.mubr.msk.bf16.mxu1 %vm453_vm0, %v1850_v36 }
  0x51   :  { %630 = vmatmul.mubr.bf16.gmra.mrb[20].mxu0 %v1813_v37  ;;  %758 = vmatmul.mubr.bf16.gmra.mrb[20].mxu1 %v1852_v38 }
  0x52   :  { %1608 = vmatprep.mubr.msk.bf16.mxu0 %vm453_vm0, %v1814_v39  ;;  %1624 = vmatprep.mubr.msk.bf16.mxu1 %vm453_vm0, %v1856_v40 }
  0x59   :  { %638 = vmatmul.mubr.bf16.gmra.mrb[24].mxu0 %v1816_v41  ;;  %766 = vmatmul.mubr.bf16.gmra.mrb[24].mxu1 %v1858_v42 }
  0x5a   :  { %1609 = vmatprep.mubr.msk.bf16.mxu0 %vm453_vm0, %v1817_v43  ;;  %1625 = vmatprep.mubr.msk.bf16.mxu1 %vm453_vm0, %v1862_v44 }
  0x61   :  { %646 = vmatmul.mubr.bf16.gmra.mrb[28].mxu0 %v1819_v45  ;;  %774 = vmatmul.mubr.bf16.gmra.mrb[28].mxu1 %v1864_v46 }
  0x62   :  { %1610 = vmatprep.mubr.msk.bf16.mxu0 %vm453_vm0, %v1823_v47  ;;  %1626 = vmatprep.mubr.msk.bf16.mxu1 %vm453_vm0, %v1868_v48 }
  0x69   :  { %654 = vmatmul.mubr.bf16.gmra.mrb[32].mxu0 %v1825_v49  ;;  %782 = vmatmul.mubr.bf16.gmra.mrb[32].mxu1 %v1870_v50 }
  0x6a   :  { %1611 = vmatprep.mubr.msk.bf16.mxu0 %vm453_vm0, %v1829_v51  ;;  %1627 = vmatprep.mubr.msk.bf16.mxu1 %vm453_vm0, %v1871_v52 }
  0x71   :  { %662 = vmatmul.mubr.bf16.gmra.mrb[36].mxu0 %v1831_v53  ;;  %790 = vmatmul.mubr.bf16.gmra.mrb[36].mxu1 %v1873_v54 }
  0x72   :  { %1612 = vmatprep.mubr.msk.bf16.mxu0 %vm453_vm0, %v1835_v55  ;;  %1628 = vmatprep.mubr.msk.bf16.mxu1 %vm453_vm0, %v1874_v56 }
  0x79   :  { %670 = vmatmul.mubr.bf16.gmra.mrb[40].mxu0 %v1837_v57  ;;  %798 = vmatmul.mubr.bf16.gmra.mrb[40].mxu1 %v1876_v58 }
  0x7a   :  { %1613 = vmatprep.mubr.msk.bf16.mxu0 %vm453_vm0, %v1841_v59  ;;  %1629 = vmatprep.mubr.msk.bf16.mxu1 %vm453_vm0, %v1877_v60 }
  0x81   :  { %678 = vmatmul.mubr.bf16.gmra.mrb[44].mxu0 %v1843_v61  ;;  %806 = vmatmul.mubr.bf16.gmra.mrb[44].mxu1 %v1879_v62 }
  0x82   :  { %1614 = vmatprep.mubr.msk.bf16.mxu0 %vm453_vm0, %v1847_v63  ;;  %1630 = vmatprep.mubr.msk.bf16.mxu1 %vm453_vm0, %v1880_v0 }
  0x89   :  { %686 = vmatmul.mubr.bf16.gmra.mrb[48].mxu0 %v1849_v1  ;;  %814 = vmatmul.mubr.bf16.gmra.mrb[48].mxu1 %v1882_v2 }
  0x8a   :  { %1615 = vmatprep.mubr.msk.bf16.mxu0 %vm453_vm0, %v1853_v3  ;;  %1631 = vmatprep.mubr.msk.bf16.mxu1 %vm453_vm0, %v1883_v4 }
  0x91   :  { %694 = vmatmul.mubr.bf16.gmra.mrb[52].mxu0 %v1855_v5  ;;  %822 = vmatmul.mubr.bf16.gmra.mrb[52].mxu1 %v1885_v6 }
  0x92   :  { %1616 = vmatprep.mubr.msk.bf16.mxu0 %vm453_vm0, %v1859_v7  ;;  %1632 = vmatprep.mubr.msk.bf16.mxu1 %vm453_vm0, %v1886_v8 }
  0x99   :  { %702 = vmatmul.mubr.bf16.gmra.mrb[56].mxu0 %v1861_v9  ;;  %830 = vmatmul.mubr.bf16.gmra.mrb[56].mxu1 %v1888_v10 }
  0x9a   :  { %1617 = vmatprep.mubr.msk.bf16.mxu0 %vm453_vm0, %v1865_v11  ;;  %1633 = vmatprep.mubr.msk.bf16.mxu1 %vm453_vm0, %v1889_v12 }
  0xa1   :  { %710 = vmatmul.mubr.bf16.gmra.mrb[60].mxu0 %v1867_v13  ;;  %838 = vmatmul.mubr.bf16.gmra.mrb[60].mxu1 %v1891_v14 }
  0xfc   :  { %v591_v16 = vpop.f32.mrb[0].mxu0  ;;  %v719_v17 = vpop.f32.mrb[0].mxu1 }
  0xfd   :  { %v592_v18 = vadd.f32 %v2203_v15, %v591_v16  ;;  %v593_v19 = vpop.f32.mrb[1].mxu0  ;;  %v2207_v20 = vadd.f32 %v2203_v15, %v719_v17  ;;  %v721_v21 = vpop.f32.mrb[1].mxu1 }
  0xfe   :  { %v594_v22 = vpop.f32.mrb[2].mxu0  ;;  %v722_v23 = vpop.f32.mrb[2].mxu1 }
  0xff   :  { %v1698_v24 = vpack.c.bf16 %v592_v18, %v592_v18  ;;  %v1308_v25 = vmul.f32 %v592_v18, %v592_v18  ;;  %v595_v26 = vadd.f32 %v2203_v15, %v594_v22  ;;  %v596_v27 = vpop.f32.mrb[3].mxu0  ;;  %v724_v28 = vpop.f32.mrb[3].mxu1  ;;  %v1730_v29 = vpack.c.bf16 %v2207_v20, %v2207_v20 }
 0x100   :  { %v2213_v30 = vadd.f32 %v2203_v15, %v722_v23  ;;  %v1175_v31 = vsel %vm1174_vm4, %v592_v18, 0.0 }
 0x101   :  { %1103 = vst.msk [vmem:[%s2895_s3] sm:$0xf] %vm1102_vm3, %v1698_v24  ;;  %v1699_v32 = vpack.c.bf16 %v595_v26, %v595_v26  ;;  %v1176_v33 = vsel %vm1174_vm4, %v595_v26, 0.0  ;;  %v1309_v34 = vmul.f32 %v595_v26, %v595_v26  ;;  %1135 = vst.msk [vmem:[%s2895_s3 + $0x80] sm:$0xf] %vm1102_vm3, %v1730_v29  ;;  %v1372_v37 = vsel %vm1174_vm4, %v1308_v25, 0.0 }
 0x102   :  { %v1177_v35 = vadd.f32 %v1176_v33, %v1175_v31  ;;  %v1731_v36 = vpack.c.bf16 %v2213_v30, %v2213_v30 }
 0x103   :  { %1104 = vst.msk [vmem:[%s2895_s3 + $0x4] sm:$0xf] %vm1102_vm3, %v1699_v32  ;;  %v1373_v38 = vsel %vm1174_vm4, %v1309_v34, 0.0 }
 0x104   :  { %v1374_v39 = vadd.f32 %v1373_v38, %v1372_v37  ;;  %v599_v40 = vpop.f32.mrb[4].mxu0  ;;  %1136 = vst.msk [vmem:[%s2895_s3 + $0x84] sm:$0xf] %vm1102_vm3, %v1731_v36  ;;  %v727_v41 = vpop.f32.mrb[4].mxu1 }
 0x105   :  { %v600_v42 = vadd.f32 %v2203_v15, %v599_v40  ;;  %v601_v43 = vpop.f32.mrb[5].mxu0  ;;  %v2239_v44 = vadd.f32 %v2203_v15, %v727_v41  ;;  %v729_v45 = vpop.f32.mrb[5].mxu1 }
 0x106   :  { %v602_v46 = vpop.f32.mrb[6].mxu0  ;;  %v730_v47 = vpop.f32.mrb[6].mxu1 }
 0x107   :  { %v1700_v48 = vpack.c.bf16 %v600_v42, %v600_v42  ;;  %v1178_v49 = vsel %vm1174_vm4, %v600_v42, 0.0  ;;  %v1310_v50 = vmul.f32 %v600_v42, %v600_v42  ;;  %v603_v51 = vadd.f32 %v2203_v15, %v602_v46  ;;  %v604_v52 = vpop.f32.mrb[7].mxu0  ;;  %v732_v53 = vpop.f32.mrb[7].mxu1 }
 0x108   :  { %v1179_v54 = vadd.f32 %v1178_v49, %v1177_v35  ;;  %v1732_v55 = vpack.c.bf16 %v2239_v44, %v2239_v44  ;;  %v2256_v62 = vadd.f32 %v2203_v15, %v730_v47 }
 0x109   :  { %1105 = vst.msk [vmem:[%s2895_s3 + $0x8] sm:$0xf] %vm1102_vm3, %v1700_v48  ;;  %v1375_v56 = vsel %vm1174_vm4, %v1310_v50, 0.0  ;;  %v1701_v57 = vpack.c.bf16 %v603_v51, %v603_v51  ;;  %v1180_v58 = vsel %vm1174_vm4, %v603_v51, 0.0  ;;  %v1311_v59 = vmul.f32 %v603_v51, %v603_v51 }
 0x10a   :  { %v1376_v60 = vadd.f32 %v1375_v56, %v1374_v39  ;;  %v1181_v61 = vadd.f32 %v1180_v58, %v1179_v54  ;;  %1137 = vst.msk [vmem:[%s2895_s3 + $0x88] sm:$0xf] %vm1102_vm3, %v1732_v55  ;;  %v1733_v2 = vpack.c.bf16 %v2256_v62, %v2256_v62 }
 0x10b   :  { %1106 = vst.msk [vmem:[%s2895_s3 + $0xc] sm:$0xf] %vm1102_vm3, %v1701_v57  ;;  %v1377_v63 = vsel %vm1174_vm4, %v1311_v59, 0.0 }
 0x10c   :  { %v1378_v0 = vadd.f32 %v1377_v63, %v1376_v60  ;;  %v607_v1 = vpop.f32.mrb[8].mxu0  ;;  %v735_v3 = vpop.f32.mrb[8].mxu1  ;;  %1138 = vst.msk [vmem:[%s2895_s3 + $0x8c] sm:$0xf] %vm1102_vm3, %v1733_v2 }
 0x10d   :  { %v608_v4 = vadd.f32 %v2203_v15, %v607_v1  ;;  %v609_v5 = vpop.f32.mrb[9].mxu0  ;;  %v2267_v6 = vadd.f32 %v2203_v15, %v735_v3  ;;  %v737_v7 = vpop.f32.mrb[9].mxu1 }
 0x10e   :  { %v610_v8 = vpop.f32.mrb[10].mxu0  ;;  %v738_v9 = vpop.f32.mrb[10].mxu1 }
 0x10f   :  { %v1702_v10 = vpack.c.bf16 %v608_v4, %v608_v4  ;;  %v1182_v11 = vsel %vm1174_vm4, %v608_v4, 0.0  ;;  %v1312_v12 = vmul.f32 %v608_v4, %v608_v4  ;;  %v611_v13 = vadd.f32 %v2203_v15, %v610_v8  ;;  %v612_v14 = vpop.f32.mrb[11].mxu0  ;;  %v740_v16 = vpop.f32.mrb[11].mxu1 }
 0x110   :  { %v1183_v17 = vadd.f32 %v1182_v11, %v1181_v61  ;;  %v1734_v18 = vpack.c.bf16 %v2267_v6, %v2267_v6  ;;  %v2288_v26 = vadd.f32 %v2203_v15, %v738_v9 }
 0x111   :  { %1107 = vst.msk [vmem:[%s2895_s3 + $0x10] sm:$0xf] %vm1102_vm3, %v1702_v10  ;;  %v1379_v19 = vsel %vm1174_vm4, %v1312_v12, 0.0  ;;  %v1703_v21 = vpack.c.bf16 %v611_v13, %v611_v13  ;;  %v1184_v22 = vsel %vm1174_vm4, %v611_v13, 0.0  ;;  %v1313_v23 = vmul.f32 %v611_v13, %v611_v13 }
 0x112   :  { %v1380_v24 = vadd.f32 %v1379_v19, %v1378_v0  ;;  %v1185_v25 = vadd.f32 %v1184_v22, %v1183_v17  ;;  %1139 = vst.msk [vmem:[%s2895_s3 + $0x90] sm:$0xf] %vm1102_vm3, %v1734_v18  ;;  %v1735_v31 = vpack.c.bf16 %v2288_v26, %v2288_v26 }
 0x113   :  { %1108 = vst.msk [vmem:[%s2895_s3 + $0x14] sm:$0xf] %vm1102_vm3, %v1703_v21  ;;  %v1381_v27 = vsel %vm1174_vm4, %v1313_v23, 0.0 }
 0x114   :  { %v1382_v28 = vadd.f32 %v1381_v27, %v1380_v24  ;;  %v615_v29 = vpop.f32.mrb[12].mxu0  ;;  %v743_v32 = vpop.f32.mrb[12].mxu1  ;;  %1140 = vst.msk [vmem:[%s2895_s3 + $0x94] sm:$0xf] %vm1102_vm3, %v1735_v31 }
 0x115   :  { %v616_v33 = vadd.f32 %v2203_v15, %v615_v29  ;;  %v617_v34 = vpop.f32.mrb[13].mxu0  ;;  %v2299_v35 = vadd.f32 %v2203_v15, %v743_v32  ;;  %v745_v36 = vpop.f32.mrb[13].mxu1 }
 0x116   :  { %v618_v37 = vpop.f32.mrb[14].mxu0  ;;  %v746_v38 = vpop.f32.mrb[14].mxu1 }
 0x117   :  { %v1704_v39 = vpack.c.bf16 %v616_v33, %v616_v33  ;;  %v1186_v40 = vsel %vm1174_vm4, %v616_v33, 0.0  ;;  %v1314_v41 = vmul.f32 %v616_v33, %v616_v33  ;;  %v619_v42 = vadd.f32 %v2203_v15, %v618_v37  ;;  %v620_v43 = vpop.f32.mrb[15].mxu0  ;;  %v748_v45 = vpop.f32.mrb[15].mxu1 }
 0x118   :  { %v1187_v46 = vadd.f32 %v1186_v40, %v1185_v25  ;;  %v1736_v47 = vpack.c.bf16 %v2299_v35, %v2299_v35  ;;  %v2320_v54 = vadd.f32 %v2203_v15, %v746_v38 }
 0x119   :  { %1109 = vst.msk [vmem:[%s2895_s3 + $0x18] sm:$0xf] %vm1102_vm3, %v1704_v39  ;;  %v1383_v48 = vsel %vm1174_vm4, %v1314_v41, 0.0  ;;  %v1705_v49 = vpack.c.bf16 %v619_v42, %v619_v42  ;;  %v1188_v50 = vsel %vm1174_vm4, %v619_v42, 0.0  ;;  %v1315_v51 = vmul.f32 %v619_v42, %v619_v42 }
 0x11a   :  { %v1384_v52 = vadd.f32 %v1383_v48, %v1382_v28  ;;  %v1189_v53 = vadd.f32 %v1188_v50, %v1187_v46  ;;  %1141 = vst.msk [vmem:[%s2895_s3 + $0x98] sm:$0xf] %vm1102_vm3, %v1736_v47  ;;  %v1737_v58 = vpack.c.bf16 %v2320_v54, %v2320_v54 }
 0x11b   :  { %1110 = vst.msk [vmem:[%s2895_s3 + $0x1c] sm:$0xf] %vm1102_vm3, %v1705_v49  ;;  %v1385_v55 = vsel %vm1174_vm4, %v1315_v51, 0.0 }
 0x11c   :  { %v1386_v56 = vadd.f32 %v1385_v55, %v1384_v52  ;;  %v623_v57 = vpop.f32.mrb[16].mxu0  ;;  %v751_v59 = vpop.f32.mrb[16].mxu1  ;;  %1142 = vst.msk [vmem:[%s2895_s3 + $0x9c] sm:$0xf] %vm1102_vm3, %v1737_v58 }
 0x11d   :  { %v624_v60 = vadd.f32 %v2203_v15, %v623_v57  ;;  %v625_v61 = vpop.f32.mrb[17].mxu0  ;;  %v2331_v63 = vadd.f32 %v2203_v15, %v751_v59  ;;  %v753_v0 = vpop.f32.mrb[17].mxu1 }
 0x11e   :  { %v626_v1 = vpop.f32.mrb[18].mxu0  ;;  %v754_v2 = vpop.f32.mrb[18].mxu1 }
 0x11f   :  { %v1706_v3 = vpack.c.bf16 %v624_v60, %v624_v60  ;;  %v1190_v4 = vsel %vm1174_vm4, %v624_v60, 0.0  ;;  %v1316_v5 = vmul.f32 %v624_v60, %v624_v60  ;;  %v627_v7 = vadd.f32 %v2203_v15, %v626_v1  ;;  %v628_v8 = vpop.f32.mrb[19].mxu0  ;;  %v756_v9 = vpop.f32.mrb[19].mxu1 }
 0x120   :  { %v1191_v10 = vadd.f32 %v1190_v4, %v1189_v53  ;;  %v1738_v11 = vpack.c.bf16 %v2331_v63, %v2331_v63  ;;  %v2352_v19 = vadd.f32 %v2203_v15, %v754_v2 }
 0x121   :  { %1111 = vst.msk [vmem:[%s2895_s3 + $0x20] sm:$0xf] %vm1102_vm3, %v1706_v3  ;;  %v1387_v12 = vsel %vm1174_vm4, %v1316_v5, 0.0  ;;  %v1707_v13 = vpack.c.bf16 %v627_v7, %v627_v7  ;;  %v1192_v14 = vsel %vm1174_vm4, %v627_v7, 0.0  ;;  %v1317_v16 = vmul.f32 %v627_v7, %v627_v7 }
 0x122   :  { %v1388_v17 = vadd.f32 %v1387_v12, %v1386_v56  ;;  %v1193_v18 = vadd.f32 %v1192_v14, %v1191_v10  ;;  %1143 = vst.msk [vmem:[%s2895_s3 + $0xa0] sm:$0xf] %vm1102_vm3, %v1738_v11  ;;  %v1739_v24 = vpack.c.bf16 %v2352_v19, %v2352_v19 }
 0x123   :  { %1112 = vst.msk [vmem:[%s2895_s3 + $0x24] sm:$0xf] %vm1102_vm3, %v1707_v13  ;;  %v1389_v21 = vsel %vm1174_vm4, %v1317_v16, 0.0 }
 0x124   :  { %v1390_v22 = vadd.f32 %v1389_v21, %v1388_v17  ;;  %v631_v23 = vpop.f32.mrb[20].mxu0  ;;  %v759_v25 = vpop.f32.mrb[20].mxu1  ;;  %1144 = vst.msk [vmem:[%s2895_s3 + $0xa4] sm:$0xf] %vm1102_vm3, %v1739_v24 }
 0x125   :  { %v632_v27 = vadd.f32 %v2203_v15, %v631_v23  ;;  %v633_v28 = vpop.f32.mrb[21].mxu0  ;;  %v2363_v29 = vadd.f32 %v2203_v15, %v759_v25  ;;  %v761_v31 = vpop.f32.mrb[21].mxu1 }
 0x126   :  { %v634_v32 = vpop.f32.mrb[22].mxu0  ;;  %v762_v33 = vpop.f32.mrb[22].mxu1 }
 0x127   :  { %v1708_v34 = vpack.c.bf16 %v632_v27, %v632_v27  ;;  %v1194_v36 = vsel %vm1174_vm4, %v632_v27, 0.0  ;;  %v1318_v37 = vmul.f32 %v632_v27, %v632_v27  ;;  %v635_v38 = vadd.f32 %v2203_v15, %v634_v32  ;;  %v636_v39 = vpop.f32.mrb[23].mxu0  ;;  %v764_v40 = vpop.f32.mrb[23].mxu1 }
 0x128   :  { %v1195_v41 = vadd.f32 %v1194_v36, %v1193_v18  ;;  %v1740_v42 = vpack.c.bf16 %v2363_v29, %v2363_v29  ;;  %v2384_v50 = vadd.f32 %v2203_v15, %v762_v33 }
 0x129   :  { %1113 = vst.msk [vmem:[%s2895_s3 + $0x28] sm:$0xf] %vm1102_vm3, %v1708_v34  ;;  %v1391_v43 = vsel %vm1174_vm4, %v1318_v37, 0.0  ;;  %v1709_v45 = vpack.c.bf16 %v635_v38, %v635_v38  ;;  %v1196_v46 = vsel %vm1174_vm4, %v635_v38, 0.0  ;;  %v1319_v47 = vmul.f32 %v635_v38, %v635_v38 }
 0x12a   :  { %v1392_v48 = vadd.f32 %v1391_v43, %v1390_v22  ;;  %v1197_v49 = vadd.f32 %v1196_v46, %v1195_v41  ;;  %1145 = vst.msk [vmem:[%s2895_s3 + $0xa8] sm:$0xf] %vm1102_vm3, %v1740_v42  ;;  %v1741_v55 = vpack.c.bf16 %v2384_v50, %v2384_v50 }
 0x12b   :  { %1114 = vst.msk [vmem:[%s2895_s3 + $0x2c] sm:$0xf] %vm1102_vm3, %v1709_v45  ;;  %v1393_v51 = vsel %vm1174_vm4, %v1319_v47, 0.0 }
 0x12c   :  { %v1394_v52 = vadd.f32 %v1393_v51, %v1392_v48  ;;  %v639_v53 = vpop.f32.mrb[24].mxu0  ;;  %v767_v56 = vpop.f32.mrb[24].mxu1  ;;  %1146 = vst.msk [vmem:[%s2895_s3 + $0xac] sm:$0xf] %vm1102_vm3, %v1741_v55 }
 0x12d   :  { %v640_v57 = vadd.f32 %v2203_v15, %v639_v53  ;;  %v641_v58 = vpop.f32.mrb[25].mxu0  ;;  %v2395_v59 = vadd.f32 %v2203_v15, %v767_v56  ;;  %v769_v60 = vpop.f32.mrb[25].mxu1 }
 0x12e   :  { %v642_v61 = vpop.f32.mrb[26].mxu0  ;;  %v770_v0 = vpop.f32.mrb[26].mxu1 }
 0x12f   :  { %v1710_v1 = vpack.c.bf16 %v640_v57, %v640_v57  ;;  %v1198_v2 = vsel %vm1174_vm4, %v640_v57, 0.0  ;;  %v1320_v3 = vmul.f32 %v640_v57, %v640_v57  ;;  %v643_v4 = vadd.f32 %v2203_v15, %v642_v61  ;;  %v644_v5 = vpop.f32.mrb[27].mxu0  ;;  %v772_v7 = vpop.f32.mrb[27].mxu1 }
 0x130   :  { %v1199_v8 = vadd.f32 %v1198_v2, %v1197_v49  ;;  %v1742_v9 = vpack.c.bf16 %v2395_v59, %v2395_v59  ;;  %v2416_v17 = vadd.f32 %v2203_v15, %v770_v0 }
 0x131   :  { %1115 = vst.msk [vmem:[%s2895_s3 + $0x30] sm:$0xf] %vm1102_vm3, %v1710_v1  ;;  %v1395_v10 = vsel %vm1174_vm4, %v1320_v3, 0.0  ;;  %v1711_v11 = vpack.c.bf16 %v643_v4, %v643_v4  ;;  %v1200_v12 = vsel %vm1174_vm4, %v643_v4, 0.0  ;;  %v1321_v13 = vmul.f32 %v643_v4, %v643_v4 }
 0x132   :  { %v1396_v14 = vadd.f32 %v1395_v10, %v1394_v52  ;;  %v1201_v16 = vadd.f32 %v1200_v12, %v1199_v8  ;;  %1147 = vst.msk [vmem:[%s2895_s3 + $0xb0] sm:$0xf] %vm1102_vm3, %v1742_v9  ;;  %v1743_v23 = vpack.c.bf16 %v2416_v17, %v2416_v17 }
 0x133   :  { %1116 = vst.msk [vmem:[%s2895_s3 + $0x34] sm:$0xf] %vm1102_vm3, %v1711_v11  ;;  %v1397_v18 = vsel %vm1174_vm4, %v1321_v13, 0.0 }
 0x134   :  { %v1398_v21 = vadd.f32 %v1397_v18, %v1396_v14  ;;  %v647_v22 = vpop.f32.mrb[28].mxu0  ;;  %v775_v24 = vpop.f32.mrb[28].mxu1  ;;  %1148 = vst.msk [vmem:[%s2895_s3 + $0xb4] sm:$0xf] %vm1102_vm3, %v1743_v23 }
 0x135   :  { %v648_v25 = vadd.f32 %v2203_v15, %v647_v22  ;;  %v649_v27 = vpop.f32.mrb[29].mxu0  ;;  %v2427_v28 = vadd.f32 %v2203_v15, %v775_v24  ;;  %v777_v31 = vpop.f32.mrb[29].mxu1 }
 0x136   :  { %v650_v32 = vpop.f32.mrb[30].mxu0  ;;  %v778_v33 = vpop.f32.mrb[30].mxu1 }
 0x137   :  { %v1712_v34 = vpack.c.bf16 %v648_v25, %v648_v25  ;;  %v1202_v36 = vsel %vm1174_vm4, %v648_v25, 0.0  ;;  %v1322_v37 = vmul.f32 %v648_v25, %v648_v25  ;;  %v651_v38 = vadd.f32 %v2203_v15, %v650_v32  ;;  %v652_v39 = vpop.f32.mrb[31].mxu0  ;;  %v780_v40 = vpop.f32.mrb[31].mxu1 }
 0x138   :  { %v1203_v41 = vadd.f32 %v1202_v36, %v1201_v16  ;;  %v1744_v42 = vpack.c.bf16 %v2427_v28, %v2427_v28  ;;  %v2448_v51 = vadd.f32 %v2203_v15, %v778_v33  ;;  %v1918_v32 = vmov 0.0  }
 0x139   :  { %1117 = vst.msk [vmem:[%s2895_s3 + $0x38] sm:$0xf] %vm1102_vm3, %v1712_v34  ;;  %v1399_v43 = vsel %vm1174_vm4, %v1322_v37, 0.0  ;;  %v1713_v45 = vpack.c.bf16 %v651_v38, %v651_v38  ;;  %v1204_v46 = vsel %vm1174_vm4, %v651_v38, 0.0  ;;  %v1323_v47 = vmul.f32 %v651_v38, %v651_v38 }
 0x13a   :  { %v1400_v48 = vadd.f32 %v1399_v43, %v1398_v21  ;;  %v1205_v49 = vadd.f32 %v1204_v46, %v1203_v41  ;;  %1149 = vst.msk [vmem:[%s2895_s3 + $0xb8] sm:$0xf] %vm1102_vm3, %v1744_v42  ;;  %v1745_v56 = vpack.c.bf16 %v2448_v51, %v2448_v51 }
 0x13b   :  { %1118 = vst.msk [vmem:[%s2895_s3 + $0x3c] sm:$0xf] %vm1102_vm3, %v1713_v45  ;;  %v1401_v52 = vsel %vm1174_vm4, %v1323_v47, 0.0 }
 0x13c   :  { %v1402_v53 = vadd.f32 %v1401_v52, %v1400_v48  ;;  %v655_v55 = vpop.f32.mrb[32].mxu0  ;;  %v783_v57 = vpop.f32.mrb[32].mxu1  ;;  %1150 = vst.msk [vmem:[%s2895_s3 + $0xbc] sm:$0xf] %vm1102_vm3, %v1745_v56 }
 0x13d   :  { %v656_v58 = vadd.f32 %v2203_v15, %v655_v55  ;;  %v657_v60 = vpop.f32.mrb[33].mxu0  ;;  %v2459_v61 = vadd.f32 %v2203_v15, %v783_v57  ;;  %v785_v0 = vpop.f32.mrb[33].mxu1  ;;  %1172 = vst.msk [vmem:[#allocation2] sm:$0x3] %vm1171_vm5, %v1918_v32 }
 0x13e   :  { %v658_v1 = vpop.f32.mrb[34].mxu0  ;;  %v786_v2 = vpop.f32.mrb[34].mxu1 }
 0x13f   :  { %v1714_v3 = vpack.c.bf16 %v656_v58, %v656_v58  ;;  %v1206_v4 = vsel %vm1174_vm4, %v656_v58, 0.0  ;;  %v1324_v5 = vmul.f32 %v656_v58, %v656_v58  ;;  %v659_v7 = vadd.f32 %v2203_v15, %v658_v1  ;;  %v660_v8 = vpop.f32.mrb[35].mxu0  ;;  %v788_v9 = vpop.f32.mrb[35].mxu1 }
 0x140   :  { %v1207_v10 = vadd.f32 %v1206_v4, %v1205_v49  ;;  %v1746_v11 = vpack.c.bf16 %v2459_v61, %v2459_v61  ;;  %v2480_v22 = vadd.f32 %v2203_v15, %v786_v2 }
 0x141   :  { %1119 = vst.msk [vmem:[%s2895_s3 + $0x40] sm:$0xf] %vm1102_vm3, %v1714_v3  ;;  %v1403_v12 = vsel %vm1174_vm4, %v1324_v5, 0.0  ;;  %v1715_v13 = vpack.c.bf16 %v659_v7, %v659_v7  ;;  %v1208_v14 = vsel %vm1174_vm4, %v659_v7, 0.0  ;;  %v1325_v16 = vmul.f32 %v659_v7, %v659_v7 }
 0x142   :  { %v1404_v18 = vadd.f32 %v1403_v12, %v1402_v53  ;;  %v1209_v21 = vadd.f32 %v1208_v14, %v1207_v10  ;;  %1151 = vst.msk [vmem:[%s2895_s3 + $0xc0] sm:$0xf] %vm1102_vm3, %v1746_v11  ;;  %v1747_v27 = vpack.c.bf16 %v2480_v22, %v2480_v22 }
 0x143   :  { %1120 = vst.msk [vmem:[%s2895_s3 + $0x44] sm:$0xf] %vm1102_vm3, %v1715_v13  ;;  %v1405_v23 = vsel %vm1174_vm4, %v1325_v16, 0.0 }
 0x144   :  { %v1406_v24 = vadd.f32 %v1405_v23, %v1404_v18  ;;  %v663_v25 = vpop.f32.mrb[36].mxu0  ;;  %v791_v31 = vpop.f32.mrb[36].mxu1  ;;  %1152 = vst.msk [vmem:[%s2895_s3 + $0xc4] sm:$0xf] %vm1102_vm3, %v1747_v27 }
 0x145   :  { %v664_v33 = vadd.f32 %v2203_v15, %v663_v25  ;;  %v665_v34 = vpop.f32.mrb[37].mxu0  ;;  %v2492_v36 = vadd.f32 %v2203_v15, %v791_v31  ;;  %v793_v37 = vpop.f32.mrb[37].mxu1 }
 0x146   :  { %v666_v38 = vpop.f32.mrb[38].mxu0  ;;  %v794_v39 = vpop.f32.mrb[38].mxu1 }
 0x147   :  { %v1716_v40 = vpack.c.bf16 %v664_v33, %v664_v33  ;;  %v1210_v41 = vsel %vm1174_vm4, %v664_v33, 0.0  ;;  %v1326_v42 = vmul.f32 %v664_v33, %v664_v33  ;;  %v667_v43 = vadd.f32 %v2203_v15, %v666_v38  ;;  %v668_v45 = vpop.f32.mrb[39].mxu0  ;;  %v796_v46 = vpop.f32.mrb[39].mxu1 }
 0x148   :  { %v1211_v47 = vadd.f32 %v1210_v41, %v1209_v21  ;;  %v1748_v48 = vpack.c.bf16 %v2492_v36, %v2492_v36  ;;  %v2513_v58 = vadd.f32 %v2203_v15, %v794_v39 }
 0x149   :  { %1121 = vst.msk [vmem:[%s2895_s3 + $0x48] sm:$0xf] %vm1102_vm3, %v1716_v40  ;;  %v1407_v49 = vsel %vm1174_vm4, %v1326_v42, 0.0  ;;  %v1717_v52 = vpack.c.bf16 %v667_v43, %v667_v43  ;;  %v1212_v53 = vsel %vm1174_vm4, %v667_v43, 0.0  ;;  %v1327_v55 = vmul.f32 %v667_v43, %v667_v43 }
 0x14a   :  { %v1408_v56 = vadd.f32 %v1407_v49, %v1406_v24  ;;  %v1213_v57 = vadd.f32 %v1212_v53, %v1211_v47  ;;  %1153 = vst.msk [vmem:[%s2895_s3 + $0xc8] sm:$0xf] %vm1102_vm3, %v1748_v48  ;;  %v1749_v2 = vpack.c.bf16 %v2513_v58, %v2513_v58 }
 0x14b   :  { %1122 = vst.msk [vmem:[%s2895_s3 + $0x4c] sm:$0xf] %vm1102_vm3, %v1717_v52  ;;  %v1409_v60 = vsel %vm1174_vm4, %v1327_v55, 0.0 }
 0x14c   :  { %v1410_v0 = vadd.f32 %v1409_v60, %v1408_v56  ;;  %v671_v1 = vpop.f32.mrb[40].mxu0  ;;  %v799_v3 = vpop.f32.mrb[40].mxu1  ;;  %1154 = vst.msk [vmem:[%s2895_s3 + $0xcc] sm:$0xf] %vm1102_vm3, %v1749_v2 }
 0x14d   :  { %v672_v4 = vadd.f32 %v2203_v15, %v671_v1  ;;  %v673_v5 = vpop.f32.mrb[41].mxu0  ;;  %v2524_v7 = vadd.f32 %v2203_v15, %v799_v3  ;;  %v801_v8 = vpop.f32.mrb[41].mxu1 }
 0x14e   :  { %v674_v9 = vpop.f32.mrb[42].mxu0  ;;  %v802_v10 = vpop.f32.mrb[42].mxu1 }
 0x14f   :  { %v1718_v11 = vpack.c.bf16 %v672_v4, %v672_v4  ;;  %v1214_v12 = vsel %vm1174_vm4, %v672_v4, 0.0  ;;  %v1328_v13 = vmul.f32 %v672_v4, %v672_v4  ;;  %v675_v14 = vadd.f32 %v2203_v15, %v674_v9  ;;  %v676_v16 = vpop.f32.mrb[43].mxu0  ;;  %v804_v18 = vpop.f32.mrb[43].mxu1 }
 0x150   :  { %v1215_v21 = vadd.f32 %v1214_v12, %v1213_v57  ;;  %v1750_v23 = vpack.c.bf16 %v2524_v7, %v2524_v7  ;;  %v2545_v34 = vadd.f32 %v2203_v15, %v802_v10 }
 0x151   :  { %1123 = vst.msk [vmem:[%s2895_s3 + $0x50] sm:$0xf] %vm1102_vm3, %v1718_v11  ;;  %v1411_v24 = vsel %vm1174_vm4, %v1328_v13, 0.0  ;;  %v1719_v25 = vpack.c.bf16 %v675_v14, %v675_v14  ;;  %v1216_v27 = vsel %vm1174_vm4, %v675_v14, 0.0  ;;  %v1329_v31 = vmul.f32 %v675_v14, %v675_v14 }
 0x152   :  { %v1412_v32 = vadd.f32 %v1411_v24, %v1410_v0  ;;  %v1217_v33 = vadd.f32 %v1216_v27, %v1215_v21  ;;  %1155 = vst.msk [vmem:[%s2895_s3 + $0xd0] sm:$0xf] %vm1102_vm3, %v1750_v23  ;;  %v1751_v40 = vpack.c.bf16 %v2545_v34, %v2545_v34 }
 0x153   :  { %1124 = vst.msk [vmem:[%s2895_s3 + $0x54] sm:$0xf] %vm1102_vm3, %v1719_v25  ;;  %v1413_v37 = vsel %vm1174_vm4, %v1329_v31, 0.0 }
 0x154   :  { %v1414_v38 = vadd.f32 %v1413_v37, %v1412_v32  ;;  %v679_v39 = vpop.f32.mrb[44].mxu0  ;;  %v807_v41 = vpop.f32.mrb[44].mxu1  ;;  %1156 = vst.msk [vmem:[%s2895_s3 + $0xd4] sm:$0xf] %vm1102_vm3, %v1751_v40 }
 0x155   :  { %v680_v42 = vadd.f32 %v2203_v15, %v679_v39  ;;  %v681_v43 = vpop.f32.mrb[45].mxu0  ;;  %v2556_v45 = vadd.f32 %v2203_v15, %v807_v41  ;;  %v809_v46 = vpop.f32.mrb[45].mxu1 }
 0x156   :  { %v682_v47 = vpop.f32.mrb[46].mxu0  ;;  %v810_v48 = vpop.f32.mrb[46].mxu1 }
 0x157   :  { %v1720_v49 = vpack.c.bf16 %v680_v42, %v680_v42  ;;  %v1218_v52 = vsel %vm1174_vm4, %v680_v42, 0.0  ;;  %v1330_v53 = vmul.f32 %v680_v42, %v680_v42  ;;  %v683_v55 = vadd.f32 %v2203_v15, %v682_v47  ;;  %v684_v56 = vpop.f32.mrb[47].mxu0  ;;  %v812_v57 = vpop.f32.mrb[47].mxu1 }
 0x158   :  { %v1219_v60 = vadd.f32 %v1218_v52, %v1217_v33  ;;  %v1752_v0 = vpack.c.bf16 %v2556_v45, %v2556_v45  ;;  %v2577_v9 = vadd.f32 %v2203_v15, %v810_v48 }
 0x159   :  { %1125 = vst.msk [vmem:[%s2895_s3 + $0x58] sm:$0xf] %vm1102_vm3, %v1720_v49  ;;  %v1415_v1 = vsel %vm1174_vm4, %v1330_v53, 0.0  ;;  %v1721_v2 = vpack.c.bf16 %v683_v55, %v683_v55  ;;  %v1220_v3 = vsel %vm1174_vm4, %v683_v55, 0.0  ;;  %v1331_v4 = vmul.f32 %v683_v55, %v683_v55 }
 0x15a   :  { %v1416_v5 = vadd.f32 %v1415_v1, %v1414_v38  ;;  %v1221_v8 = vadd.f32 %v1220_v3, %v1219_v60  ;;  %1157 = vst.msk [vmem:[%s2895_s3 + $0xd8] sm:$0xf] %vm1102_vm3, %v1752_v0  ;;  %v1753_v13 = vpack.c.bf16 %v2577_v9, %v2577_v9 }
 0x15b   :  { %1126 = vst.msk [vmem:[%s2895_s3 + $0x5c] sm:$0xf] %vm1102_vm3, %v1721_v2  ;;  %v1417_v10 = vsel %vm1174_vm4, %v1331_v4, 0.0 }
 0x15c   :  { %v1418_v11 = vadd.f32 %v1417_v10, %v1416_v5  ;;  %v687_v12 = vpop.f32.mrb[48].mxu0  ;;  %v815_v14 = vpop.f32.mrb[48].mxu1  ;;  %1158 = vst.msk [vmem:[%s2895_s3 + $0xdc] sm:$0xf] %vm1102_vm3, %v1753_v13 }
 0x15d   :  { %v688_v16 = vadd.f32 %v2203_v15, %v687_v12  ;;  %v689_v18 = vpop.f32.mrb[49].mxu0  ;;  %v2588_v21 = vadd.f32 %v2203_v15, %v815_v14  ;;  %v817_v23 = vpop.f32.mrb[49].mxu1 }
 0x15e   :  { %v690_v24 = vpop.f32.mrb[50].mxu0  ;;  %v818_v25 = vpop.f32.mrb[50].mxu1 }
 0x15f   :  { %v1722_v27 = vpack.c.bf16 %v688_v16, %v688_v16  ;;  %v1222_v31 = vsel %vm1174_vm4, %v688_v16, 0.0  ;;  %v1332_v32 = vmul.f32 %v688_v16, %v688_v16  ;;  %v691_v33 = vadd.f32 %v2203_v15, %v690_v24  ;;  %v692_v37 = vpop.f32.mrb[51].mxu0  ;;  %v820_v38 = vpop.f32.mrb[51].mxu1 }
 0x160   :  { %v1223_v39 = vadd.f32 %v1222_v31, %v1221_v8  ;;  %v1754_v40 = vpack.c.bf16 %v2588_v21, %v2588_v21  ;;  %v2609_v49 = vadd.f32 %v2203_v15, %v818_v25 }
 0x161   :  { %1127 = vst.msk [vmem:[%s2895_s3 + $0x60] sm:$0xf] %vm1102_vm3, %v1722_v27  ;;  %v1419_v41 = vsel %vm1174_vm4, %v1332_v32, 0.0  ;;  %v1723_v42 = vpack.c.bf16 %v691_v33, %v691_v33  ;;  %v1224_v43 = vsel %vm1174_vm4, %v691_v33, 0.0  ;;  %v1333_v46 = vmul.f32 %v691_v33, %v691_v33 }
 0x162   :  { %v1420_v47 = vadd.f32 %v1419_v41, %v1418_v11  ;;  %v1225_v48 = vadd.f32 %v1224_v43, %v1223_v39  ;;  %1159 = vst.msk [vmem:[%s2895_s3 + $0xe0] sm:$0xf] %vm1102_vm3, %v1754_v40  ;;  %v1755_v56 = vpack.c.bf16 %v2609_v49, %v2609_v49 }
 0x163   :  { %1128 = vst.msk [vmem:[%s2895_s3 + $0x64] sm:$0xf] %vm1102_vm3, %v1723_v42  ;;  %v1421_v52 = vsel %vm1174_vm4, %v1333_v46, 0.0 }
 0x164   :  { %v1422_v53 = vadd.f32 %v1421_v52, %v1420_v47  ;;  %v695_v55 = vpop.f32.mrb[52].mxu0  ;;  %v823_v57 = vpop.f32.mrb[52].mxu1  ;;  %1160 = vst.msk [vmem:[%s2895_s3 + $0xe4] sm:$0xf] %vm1102_vm3, %v1755_v56 }
 0x165   :  { %v696_v60 = vadd.f32 %v2203_v15, %v695_v55  ;;  %v697_v0 = vpop.f32.mrb[53].mxu0  ;;  %v2620_v1 = vadd.f32 %v2203_v15, %v823_v57  ;;  %v825_v2 = vpop.f32.mrb[53].mxu1 }
 0x166   :  { %v698_v3 = vpop.f32.mrb[54].mxu0  ;;  %v826_v4 = vpop.f32.mrb[54].mxu1 }
 0x167   :  { %v1724_v5 = vpack.c.bf16 %v696_v60, %v696_v60  ;;  %v1226_v8 = vsel %vm1174_vm4, %v696_v60, 0.0  ;;  %v1334_v10 = vmul.f32 %v696_v60, %v696_v60  ;;  %v699_v11 = vadd.f32 %v2203_v15, %v698_v3  ;;  %v700_v12 = vpop.f32.mrb[55].mxu0  ;;  %v828_v13 = vpop.f32.mrb[55].mxu1 }
 0x168   :  { %v1227_v14 = vadd.f32 %v1226_v8, %v1225_v48  ;;  %v1756_v16 = vpack.c.bf16 %v2620_v1, %v2620_v1  ;;  %v2641_v32 = vadd.f32 %v2203_v15, %v826_v4 }
 0x169   :  { %1129 = vst.msk [vmem:[%s2895_s3 + $0x68] sm:$0xf] %vm1102_vm3, %v1724_v5  ;;  %v1423_v18 = vsel %vm1174_vm4, %v1334_v10, 0.0  ;;  %v1725_v23 = vpack.c.bf16 %v699_v11, %v699_v11  ;;  %v1228_v24 = vsel %vm1174_vm4, %v699_v11, 0.0  ;;  %v1335_v25 = vmul.f32 %v699_v11, %v699_v11 }
 0x16a   :  { %v1424_v27 = vadd.f32 %v1423_v18, %v1422_v53  ;;  %v1229_v31 = vadd.f32 %v1228_v24, %v1227_v14  ;;  %1161 = vst.msk [vmem:[%s2895_s3 + $0xe8] sm:$0xf] %vm1102_vm3, %v1756_v16  ;;  %v1757_v39 = vpack.c.bf16 %v2641_v32, %v2641_v32 }
 0x16b   :  { %1130 = vst.msk [vmem:[%s2895_s3 + $0x6c] sm:$0xf] %vm1102_vm3, %v1725_v23  ;;  %v1425_v33 = vsel %vm1174_vm4, %v1335_v25, 0.0 }
 0x16c   :  { %v1426_v37 = vadd.f32 %v1425_v33, %v1424_v27  ;;  %v703_v38 = vpop.f32.mrb[56].mxu0  ;;  %v831_v40 = vpop.f32.mrb[56].mxu1  ;;  %1162 = vst.msk [vmem:[%s2895_s3 + $0xec] sm:$0xf] %vm1102_vm3, %v1757_v39 }
 0x16d   :  { %v704_v41 = vadd.f32 %v2203_v15, %v703_v38  ;;  %v705_v42 = vpop.f32.mrb[57].mxu0  ;;  %v2652_v43 = vadd.f32 %v2203_v15, %v831_v40  ;;  %v833_v46 = vpop.f32.mrb[57].mxu1 }
 0x16e   :  { %v706_v47 = vpop.f32.mrb[58].mxu0  ;;  %v834_v48 = vpop.f32.mrb[58].mxu1 }
 0x16f   :  { %v1726_v52 = vpack.c.bf16 %v704_v41, %v704_v41  ;;  %v1230_v53 = vsel %vm1174_vm4, %v704_v41, 0.0  ;;  %v1336_v55 = vmul.f32 %v704_v41, %v704_v41  ;;  %v707_v56 = vadd.f32 %v2203_v15, %v706_v47  ;;  %v708_v57 = vpop.f32.mrb[59].mxu0  ;;  %v836_v60 = vpop.f32.mrb[59].mxu1 }
 0x170   :  { %v1231_v0 = vadd.f32 %v1230_v53, %v1229_v31  ;;  %v1758_v2 = vpack.c.bf16 %v2652_v43, %v2652_v43  ;;  %v2673_v12 = vadd.f32 %v2203_v15, %v834_v48  ;;  %v1340_v47 = vmul.f32 %v2207_v20, %v2207_v20 }
 0x171   :  { %1131 = vst.msk [vmem:[%s2895_s3 + $0x70] sm:$0xf] %vm1102_vm3, %v1726_v52  ;;  %v1427_v3 = vsel %vm1174_vm4, %v1336_v55, 0.0  ;;  %v1727_v4 = vpack.c.bf16 %v707_v56, %v707_v56  ;;  %v1232_v5 = vsel %vm1174_vm4, %v707_v56, 0.0  ;;  %v1337_v8 = vmul.f32 %v707_v56, %v707_v56 }
 0x172   :  { %v1428_v10 = vadd.f32 %v1427_v3, %v1426_v37  ;;  %v1233_v11 = vadd.f32 %v1232_v5, %v1231_v0  ;;  %1163 = vst.msk [vmem:[%s2895_s3 + $0xf0] sm:$0xf] %vm1102_vm3, %v1758_v2  ;;  %v1759_v18 = vpack.c.bf16 %v2673_v12, %v2673_v12  ;;  %v1238_v3 = vsel %vm1174_vm4, %v2207_v20, 0.0 }
 0x173   :  { %1132 = vst.msk [vmem:[%s2895_s3 + $0x74] sm:$0xf] %vm1102_vm3, %v1727_v4  ;;  %v1429_v13 = vsel %vm1174_vm4, %v1337_v8, 0.0  ;;  %v1341_v4 = vmul.f32 %v2213_v30, %v2213_v30  ;;  %v1240_v20 = vsel %vm1174_vm4, %v2213_v30, 0.0 }
 0x174   :  { %v1430_v14 = vadd.f32 %v1429_v13, %v1428_v10  ;;  %v711_v16 = vpop.f32.mrb[60].mxu0  ;;  %v839_v23 = vpop.f32.mrb[60].mxu1  ;;  %1164 = vst.msk [vmem:[%s2895_s3 + $0xf4] sm:$0xf] %vm1102_vm3, %v1759_v18  ;;  %v1342_v13 = vmul.f32 %v2239_v44, %v2239_v44 }
 0x175   :  { %v712_v24 = vadd.f32 %v2203_v15, %v711_v16  ;;  %v713_v25 = vpop.f32.mrb[61].mxu0  ;;  %v2684_v27 = vadd.f32 %v2203_v15, %v839_v23  ;;  %v841_v31 = vpop.f32.mrb[61].mxu1  ;;  %v1437_v18 = vsel %vm1174_vm4, %v1341_v4, 0.0  ;;  %v1242_v23 = vsel %vm1174_vm4, %v2239_v44, 0.0 }
 0x176   :  { %v714_v33 = vpop.f32.mrb[62].mxu0  ;;  %v842_v37 = vpop.f32.mrb[62].mxu1  ;;  %v1439_v31 = vsel %vm1174_vm4, %v1342_v13, 0.0  ;;  %v1246_v44 = vsel %vm1174_vm4, %v2267_v6, 0.0  ;;  %v1350_v13 = vmul.f32 %v2363_v29, %v2363_v29 }
 0x177   :  { %v1728_v38 = vpack.c.bf16 %v712_v24, %v712_v24  ;;  %v1234_v39 = vsel %vm1174_vm4, %v712_v24, 0.0  ;;  %v1338_v40 = vmul.f32 %v712_v24, %v712_v24  ;;  %v715_v41 = vadd.f32 %v2203_v15, %v714_v33  ;;  %v716_v42 = vpop.f32.mrb[63].mxu0  ;;  %v844_v46 = vpop.f32.mrb[63].mxu1 }
 0x178   :  { %v1235_v48 = vadd.f32 %v1234_v39, %v1233_v11  ;;  %v1760_v52 = vpack.c.bf16 %v2684_v27, %v2684_v27  ;;  %v2707_v2 = vadd.f32 %v2203_v15, %v842_v37  ;;  %v1435_v15 = vsel %vm1174_vm4, %v1340_v47, 0.0 }
 0x179   :  { %1133 = vst.msk [vmem:[%s2895_s3 + $0x78] sm:$0xf] %vm1102_vm3, %v1728_v38  ;;  %v1431_v53 = vsel %vm1174_vm4, %v1338_v40, 0.0  ;;  %v1729_v55 = vpack.c.bf16 %v715_v41, %v715_v41  ;;  %v1236_v56 = vsel %vm1174_vm4, %v715_v41, 0.0  ;;  %v1339_v57 = vmul.f32 %v715_v41, %v715_v41 }
 0x17a   :  { %v1432_v60 = vadd.f32 %v1431_v53, %v1430_v14  ;;  %v1237_v0 = vadd.f32 %v1236_v56, %v1235_v48  ;;  %1165 = vst.msk [vmem:[%s2895_s3 + $0xf8] sm:$0xf] %vm1102_vm3, %v1760_v52  ;;  %v1761_v11 = vpack.c.bf16 %v2707_v2, %v2707_v2  ;;  %v1343_v24 = vmul.f32 %v2256_v62, %v2256_v62 }
 0x17b   :  { %1134 = vst.msk [vmem:[%s2895_s3 + $0x7c] sm:$0xf] %vm1102_vm3, %v1729_v55  ;;  %v1433_v5 = vsel %vm1174_vm4, %v1339_v57, 0.0  ;;  %v1244_v33 = vsel %vm1174_vm4, %v2256_v62, 0.0  ;;  %v1344_v37 = vmul.f32 %v2267_v6, %v2267_v6  ;;  %v1345_v41 = vmul.f32 %v2288_v26, %v2288_v26 }
 0x17c   :  { %v1239_v8 = vadd.f32 %v1238_v3, %v1237_v0  ;;  %v1434_v10 = vadd.f32 %v1433_v5, %v1432_v60  ;;  %1166 = vst.msk [vmem:[%s2895_s3 + $0xfc] sm:$0xf] %vm1102_vm3, %v1761_v11  ;;  %v1441_v40 = vsel %vm1174_vm4, %v1343_v24, 0.0  ;;  %v1248_v62 = vsel %vm1174_vm4, %v2288_v26, 0.0  ;;  %s1919_s3 = smov [#allocation2]  }
 0x17d   :  { %v1443_v47 = vsel %vm1174_vm4, %v1344_v37, 0.0  ;;  %v1346_v48 = vmul.f32 %v2299_v35, %v2299_v35  ;;  %v1445_v55 = vsel %vm1174_vm4, %v1345_v41, 0.0  ;;  %v1250_v6 = vsel %vm1174_vm4, %v2299_v35, 0.0  ;;  %s1517_s14 = sshll.u32 %s1919_s3, 4  ;;  %s1518_s14 = int_to_ptr.vmem [resolvable:$true] %s1517_s14 }
 0x17e   :  { %v1241_v14 = vadd.f32 %v1240_v20, %v1239_v8  ;;  %v1436_v16 = vadd.f32 %v1435_v15, %v1434_v10  ;;  %v1347_v56 = vmul.f32 %v2320_v54, %v2320_v54  ;;  %v1252_v26 = vsel %vm1174_vm4, %v2320_v54, 0.0  ;;  %s1892_s15 = scalar_lea.vmem %s1518_s14, 32  ;;  %p1897_p1 = scmp.lt.s32.totalorder %s1518_s14, %s1518_s14 }
 0x17f   :  { %v1447_v0 = vsel %vm1174_vm4, %v1346_v48, 0.0  ;;  %v1348_v3 = vmul.f32 %v2331_v63, %v2331_v63  ;;  %v1254_v35 = vsel %vm1174_vm4, %v2331_v63, 0.0  ;;  %v1349_v10 = vmul.f32 %v2352_v19, %v2352_v19  ;;  %p1893_p0 = scmp.ne.s32.totalorder %s1518_s14, %s1892_s15  ;;  %p1898_p2 = scmp.lt.s32.totalorder %s1892_s15, %s1892_s15 }
 0x180   :  { %v1243_v25 = vadd.f32 %v1242_v23, %v1241_v14  ;;  %v1438_v30 = vadd.f32 %v1437_v18, %v1436_v16  ;;  %v1449_v8 = vsel %vm1174_vm4, %v1347_v56, 0.0  ;;  %v1256_v54 = vsel %vm1174_vm4, %v2352_v19, 0.0 }
 0x181   :  { %v1451_v20 = vsel %vm1174_vm4, %v1348_v3, 0.0  ;;  %v1453_v18 = vsel %vm1174_vm4, %v1349_v10, 0.0  ;;  %v1258_v63 = vsel %vm1174_vm4, %v2363_v29, 0.0  ;;  %v1351_v23 = vmul.f32 %v2384_v50, %v2384_v50  ;;  %p1899_p3 = por %p1898_p2, %p1897_p1 }
 0x182   :  { %v1245_v38 = vadd.f32 %v1244_v33, %v1243_v25  ;;  %v1440_v39 = vadd.f32 %v1439_v31, %v1438_v30  ;;  %v1455_v30 = vsel %vm1174_vm4, %v1350_v13, 0.0  ;;  %v1260_v19 = vsel %vm1174_vm4, %v2384_v50, 0.0 }
 0x183   :  { %v1352_v31 = vmul.f32 %v2395_v59, %v2395_v59  ;;  %v1262_v29 = vsel %vm1174_vm4, %v2395_v59, 0.0  ;;  %v1264_v50 = vsel %vm1174_vm4, %v2416_v17, 0.0  ;;  %v1266_v59 = vsel %vm1174_vm4, %v2427_v28, 0.0  ;;  %p1900_p4 = pnand %p1899_p3, %p1893_p0 }
 0x184   :  { %v1247_v42 = vadd.f32 %v1246_v44, %v1245_v38  ;;  %v1442_v46 = vadd.f32 %v1441_v40, %v1440_v39  ;;  %v1457_v38 = vsel %vm1174_vm4, %v1351_v23, 0.0  ;;  %v1353_v39 = vmul.f32 %v2416_v17, %v2416_v17 }
 0x185   :  { %v1459_v41 = vsel %vm1174_vm4, %v1352_v31, 0.0  ;;  %v1355_v48 = vmul.f32 %v2448_v51, %v2448_v51  ;;  %v1268_v17 = vsel %vm1174_vm4, %v2448_v51, 0.0  ;;  %v1272_v51 = vsel %vm1174_vm4, %v2480_v22, 0.0 }
 0x186   :  { %v1249_v52 = vadd.f32 %v1248_v62, %v1247_v42  ;;  %v1444_v53 = vadd.f32 %v1443_v47, %v1442_v46  ;;  %v1354_v42 = vmul.f32 %v2427_v28, %v2427_v28  ;;  %v1461_v62 = vsel %vm1174_vm4, %v1353_v39, 0.0 }
 0x187   :  { %v1270_v28 = vsel %vm1174_vm4, %v2459_v61, 0.0  ;;  %v1360_v13 = vmul.f32 %v2524_v7, %v2524_v7 }
 0x188   :  { %v1251_v57 = vadd.f32 %v1250_v6, %v1249_v52  ;;  %v1446_v60 = vadd.f32 %v1445_v55, %v1444_v53  ;;  %v1463_v55 = vsel %vm1174_vm4, %v1354_v42, 0.0  ;;  %v1356_v6 = vmul.f32 %v2459_v61, %v2459_v61 }
 0x189   :  { %v1274_v61 = vsel %vm1174_vm4, %v2492_v36, 0.0  ;;  %v1365_v42 = vmul.f32 %v2609_v49, %v2609_v49 }
 0x18a   :  { %v1253_v4 = vadd.f32 %v1252_v26, %v1251_v57  ;;  %v1448_v5 = vadd.f32 %v1447_v0, %v1446_v60  ;;  %v1465_v60 = vsel %vm1174_vm4, %v1355_v48, 0.0  ;;  %v1357_v0 = vmul.f32 %v2480_v22, %v2480_v22 }
 0x18b   :  { %v1276_v22 = vsel %vm1174_vm4, %v2513_v58, 0.0 }
 0x18c   :  { %v1450_v11 = vadd.f32 %v1449_v8, %v1448_v5  ;;  %v1255_v15 = vadd.f32 %v1254_v35, %v1253_v4  ;;  %v1467_v4 = vsel %vm1174_vm4, %v1356_v6, 0.0  ;;  %v1358_v5 = vmul.f32 %v2492_v36, %v2492_v36 }
 0x18d   :  { %v1469_v10 = vsel %vm1174_vm4, %v1357_v0, 0.0  ;;  %v1278_v36 = vsel %vm1174_vm4, %v2524_v7, 0.0  ;;  %v1282_v7 = vsel %vm1174_vm4, %v2556_v45, 0.0 }
 0x18e   :  { %v1257_v14 = vadd.f32 %v1256_v54, %v1255_v15  ;;  %v1452_v16 = vadd.f32 %v1451_v20, %v1450_v11  ;;  %v1359_v11 = vmul.f32 %v2513_v58, %v2513_v58  ;;  %v1471_v54 = vsel %vm1174_vm4, %v1358_v5, 0.0 }
 0x18f   :  { %v1280_v58 = vsel %vm1174_vm4, %v2545_v34, 0.0  ;;  %v1296_v5 = vsel %vm1174_vm4, %v2673_v12, 0.0 }
 0x190   :  { %v1259_v24 = vadd.f32 %v1258_v63, %v1257_v14  ;;  %v1454_v25 = vadd.f32 %v1453_v18, %v1452_v16  ;;  %v1473_v18 = vsel %vm1174_vm4, %v1359_v11, 0.0  ;;  %v1361_v63 = vmul.f32 %v2545_v34, %v2545_v34 }
 0x191   :  { %v1284_v34 = vsel %vm1174_vm4, %v2577_v9, 0.0  ;;  %v1371_v11 = vmul.f32 %v2707_v2, %v2707_v2 }
 0x192   :  { %v1261_v33 = vadd.f32 %v1260_v19, %v1259_v24  ;;  %v1456_v37 = vadd.f32 %v1455_v30, %v1454_v25  ;;  %v1475_v25 = vsel %vm1174_vm4, %v1360_v13, 0.0  ;;  %v1362_v30 = vmul.f32 %v2556_v45, %v2556_v45 }
 0x193   :  { %v1286_v45 = vsel %vm1174_vm4, %v2588_v21, 0.0 }
 0x194   :  { %v1263_v40 = vadd.f32 %v1262_v29, %v1261_v33  ;;  %v1458_v44 = vadd.f32 %v1457_v38, %v1456_v37  ;;  %v1477_v33 = vsel %vm1174_vm4, %v1361_v63, 0.0  ;;  %v1363_v37 = vmul.f32 %v2577_v9, %v2577_v9 }
 0x195   :  { %v1479_v39 = vsel %vm1174_vm4, %v1362_v30, 0.0  ;;  %v1288_v9 = vsel %vm1174_vm4, %v2609_v49, 0.0  ;;  %v1292_v49 = vsel %vm1174_vm4, %v2641_v32, 0.0 }
 0x196   :  { %v1265_v46 = vadd.f32 %v1264_v50, %v1263_v40  ;;  %v1460_v47 = vadd.f32 %v1459_v41, %v1458_v44  ;;  %v1364_v40 = vmul.f32 %v2588_v21, %v2588_v21  ;;  %v1481_v50 = vsel %vm1174_vm4, %v1363_v37, 0.0 }
 0x197   :  { %v1290_v21 = vsel %vm1174_vm4, %v2620_v1, 0.0 }
 0x198   :  { %v1267_v52 = vadd.f32 %v1266_v59, %v1265_v46  ;;  %v1462_v53 = vadd.f32 %v1461_v62, %v1460_v47  ;;  %v1483_v62 = vsel %vm1174_vm4, %v1364_v40, 0.0  ;;  %v1366_v59 = vmul.f32 %v2620_v1, %v2620_v1 }
 0x199   :  { %v1294_v1 = vsel %vm1174_vm4, %v2652_v43, 0.0 }
 0x19a   :  { %v1269_v56 = vadd.f32 %v1268_v17, %v1267_v52  ;;  %v1464_v57 = vadd.f32 %v1463_v55, %v1462_v53  ;;  %v1485_v53 = vsel %vm1174_vm4, %v1365_v42, 0.0  ;;  %v1367_v55 = vmul.f32 %v2641_v32, %v2641_v32 }
 0x19c   :  { %v1271_v26 = vadd.f32 %v1270_v28, %v1269_v56  ;;  %v1466_v3 = vadd.f32 %v1465_v60, %v1464_v57  ;;  %v1487_v56 = vsel %vm1174_vm4, %v1366_v59, 0.0  ;;  %v1368_v57 = vmul.f32 %v2652_v43, %v2652_v43 }
 0x19d   :  { %v1489_v0 = vsel %vm1174_vm4, %v1367_v55, 0.0 }
 0x19e   :  { %v1468_v8 = vadd.f32 %v1467_v4, %v1466_v3  ;;  %v1273_v35 = vadd.f32 %v1272_v51, %v1271_v26  ;;  %v1369_v26 = vmul.f32 %v2673_v12, %v2673_v12  ;;  %v1370_v3 = vmul.f32 %v2684_v27, %v2684_v27 }
 0x19f   :  { %v1491_v32 = vsel %vm1174_vm4, %v1368_v57, 0.0  ;;  %v1497_v12 = vsel %vm1174_vm4, %v1371_v11, 0.0 }
 0x1a0   :  { %v1470_v15 = vadd.f32 %v1469_v10, %v1468_v8  ;;  %v1275_v20 = vadd.f32 %v1274_v61, %v1273_v35  ;;  %v1298_v8 = vsel %vm1174_vm4, %v2684_v27, 0.0  ;;  %v1493_v43 = vsel %vm1174_vm4, %v1369_v26, 0.0 }
 0x1a1   :  { %v1495_v61 = vsel %vm1174_vm4, %v1370_v3, 0.0 }
 0x1a2   :  { %v1472_v14 = vadd.f32 %v1471_v54, %v1470_v15  ;;  %v1277_v16 = vadd.f32 %v1276_v22, %v1275_v20  ;;  %v1300_v54 = vsel %vm1174_vm4, %v2707_v2, 0.0 }
 0x1a4   :  { %v1474_v23 = vadd.f32 %v1473_v18, %v1472_v14  ;;  %v1279_v24 = vadd.f32 %v1278_v36, %v1277_v16 }
 0x1a6   :  { %v1476_v19 = vadd.f32 %v1475_v25, %v1474_v23  ;;  %v1281_v31 = vadd.f32 %v1280_v58, %v1279_v24 }
 0x1a8   :  { %v1478_v38 = vadd.f32 %v1477_v33, %v1476_v19  ;;  %v1283_v29 = vadd.f32 %v1282_v7, %v1281_v31  ;;  %v1173_v31 = vld [vmem:[#allocation2] sm:$0x3] }
 0x1aa   :  { %v1480_v44 = vadd.f32 %v1479_v39, %v1478_v38  ;;  %v1285_v41 = vadd.f32 %v1284_v34, %v1283_v29 }
 0x1ac   :  { %v1482_v46 = vadd.f32 %v1481_v50, %v1480_v44  ;;  %v1287_v47 = vadd.f32 %v1286_v45, %v1285_v41 }
 0x1ae   :  { %v1484_v48 = vadd.f32 %v1483_v62, %v1482_v46  ;;  %v1289_v52 = vadd.f32 %v1288_v9, %v1287_v47 }
 0x1b0   :  { %v1486_v17 = vadd.f32 %v1485_v53, %v1484_v48  ;;  %v1291_v6 = vadd.f32 %v1290_v21, %v1289_v52 }
 0x1b2   :  { %v1488_v60 = vadd.f32 %v1487_v56, %v1486_v17  ;;  %v1293_v28 = vadd.f32 %v1292_v49, %v1291_v6 }
 0x1b4   :  { %v1490_v4 = vadd.f32 %v1489_v0, %v1488_v60  ;;  %v1295_v51 = vadd.f32 %v1294_v1, %v1293_v28 }
 0x1b6   :  { %v1492_v35 = vadd.f32 %v1491_v32, %v1490_v4  ;;  %v1297_v10 = vadd.f32 %v1296_v5, %v1295_v51 }
 0x1b8   :  { %v1494_v15 = vadd.f32 %v1493_v43, %v1492_v35  ;;  %v1299_v20 = vadd.f32 %v1298_v8, %v1297_v10 }
 0x1ba   :  { %v1496_v22 = vadd.f32 %v1495_v61, %v1494_v15  ;;  %v1301_v13 = vadd.f32 %v1300_v54, %v1299_v20 }
 0x1bc   :  { %v1302_v14 = vrot.slane %v1301_v13, 4  ;;  %v1498_v27 = vadd.f32 %v1497_v12, %v1496_v22 }
 0x1be   :  { %v1303_v16 = vadd.f32 %v1302_v14, %v1301_v13  ;;  %v1499_v18 = vrot.slane %v1498_v27, 4 }
 0x1c0   :  { %v1304_v36 = vrot.slane %v1303_v16, 2  ;;  %v1500_v63 = vadd.f32 %v1499_v18, %v1498_v27 }
 0x1c2   :  { %v1305_v23 = vadd.f32 %v1304_v36, %v1303_v16  ;;  %v1501_v24 = vrot.slane %v1500_v63, 2 }
 0x1c4   :  { %v1306_v25 = vrot.slane %v1305_v23, 1  ;;  %v1502_v58 = vadd.f32 %v1501_v24, %v1500_v63 }
 0x1c6   :  { %v1503_v30 = vrot.slane %v1502_v58, 1  ;;  %v1307_v19 = vadd.f32 %v1306_v25, %v1305_v23 }
 0x1c8   :  { %v1504_v33 = vadd.f32 %v1503_v30, %v1502_v58 }
 0x1ca   :  { %v1505_v2 = vsel %vm550_vm1, %v1307_v19, %v1504_v33 }
 0x1cb   :  { %v1506_v7 = vadd.f32 %v1505_v2, %v1173_v31 }
 0x1cd   :  { %1508 = vst.msk [vmem:[#allocation2] sm:$0x3] %vm1171_vm5, %v1506_v7 }
 0x1ce   :  { %1903 = shalt.err (!%p1900_p4)
}
 0x1cf   :  { %s1904_s1 = scalar_lea.hbm %s2896_s4, 32 }
 0x1d0   :  { %p1905_p5 = scmp.ne.s32.totalorder %s2896_s4, %s1904_s1  ;;  %p1908_p6 = scmp.lt.u32.totalorder %s1904_s1, %s2896_s4 }
 0x1d2   :  { %p1910_p7 = pnand %p1908_p6, %p1905_p5 }
 0x1d4   :  { %1913 = shalt.err (!%p1910_p7)
}
 0x1d5   :  { %1520 = dma.vmem_to_hbm [thread:$0]  %s1518_s14, 32, %s2896_s4, [#allocation3]  }
 0x1d6   :  { %1914 = dma.done.wait [#allocation3], 32  }
 0x1d7   :  { %1915 = vsyncadd [#allocation3], 4294967264 }
 0x1d8   :  { %1526 = vsyncpa [#allocation3], 1 }

</bundles_post_ra>
